<compile_context>
chip_gen: v7x
topology: tpu7x:2x2x1
jax: 0.10.0
libtpu: 0.0.40
codegen_flags: <defaults>
</compile_context>

<pallas_src>
from functools import partial

import jax
import jax.numpy as jnp
from jax.experimental import pallas as pl
from jax.experimental.pallas import tpu as pltpu


def _dwconv_bn_kernel(w_ref, shift_ref, x_ref, o_ref, xpad_ref,
                      *, H, W, K, Nblk, Cblk, pad):
    # w_ref:     VMEM (K*K, Cblk)            depthwise taps, pre-scaled by BN scale
    # shift_ref: VMEM (1, Cblk)              folded BN shift
    # x_ref:     VMEM (Nblk, H, W, Cblk)     input block (channels on lanes)
    # o_ref:     VMEM (Nblk, H, W, Cblk)
    # xpad_ref:  VMEM (Nblk, H+2p, W+2p, Cblk) scratch: zero halo + interior copy
    xpad_ref[...] = jnp.zeros_like(xpad_ref)          # halo zeros (cheap vs 9 taps)
    xpad_ref[:, pad:pad + H, pad:pad + W, :] = x_ref[...]

    acc = jnp.zeros((Nblk, H, W, Cblk), jnp.float32)
    for kh in range(K):                               # static KxK unroll
        for kw in range(K):
            tap = xpad_ref[:, kh:kh + H, kw:kw + W, :]          # shifted window
            wv = w_ref[kh * K + kw:kh * K + kw + 1, :]          # (1, Cblk) per-lane
            acc = acc + tap * wv
    o_ref[...] = (acc + shift_ref[0:1, :]).astype(o_ref.dtype)


def depthwise_conv_bn(x, weight, conv_bias, gamma, beta, run_mean, run_var,
                      *, eps=1e-5, padding=1):
    """x: (N, C, H, W); weight: (C, 1, K, K) depthwise (groups == C).

    BatchNorm applied in inference mode (running stats); BN scale is folded
    into the conv taps, BN shift + conv bias into a per-channel additive term.
    """
    N, C, H, W = x.shape
    K = weight.shape[-1]
    assert weight.shape == (C, 1, K, K), "depthwise: groups must equal channels"
    assert padding == (K - 1) // 2, "kernel assumes 'same' padding, stride=1"

    f32 = jnp.float32
    inv_std = jax.lax.rsqrt(run_var.astype(f32) + eps)
    scale = gamma.astype(f32) * inv_std                                   # (C,)
    shift = (conv_bias.astype(f32) - run_mean.astype(f32)) * scale + beta.astype(f32)
    # Fold BN scale into the taps; lay out taps as (K*K, C) for per-lane broadcast.
    w_taps = (weight.reshape(C, K * K).astype(f32) * scale[:, None]).T    # (K*K, C)

    # Channels -> lanes. Pad C to a multiple of 128 so stores are unmasked.
    Cblk = 128
    Cp = ((C + Cblk - 1) // Cblk) * Cblk
    x_nhwc = jnp.transpose(x.astype(f32), (0, 2, 3, 1))                   # (N,H,W,C)
    if Cp != C:
        x_nhwc = jnp.pad(x_nhwc, ((0, 0), (0, 0), (0, 0), (0, Cp - C)))
        w_taps = jnp.pad(w_taps, ((0, 0), (0, Cp - C)))
        shift = jnp.pad(shift, ((0, Cp - C),))
    shift2d = shift.reshape(1, Cp)

    # Coarsen the batch axis: largest divisor of N whose input block <= ~2 MiB.
    per_img_bytes = H * W * Cblk * 4
    Nblk = 1
    for d in range(N, 0, -1):
        if N % d == 0 and d * per_img_bytes <= 2 * 1024 * 1024:
            Nblk = d
            break

    grid = (N // Nblk, Cp // Cblk)
    Hp, Wp = H + 2 * padding, W + 2 * padding

    kernel = partial(_dwconv_bn_kernel, H=H, W=W, K=K,
                     Nblk=Nblk, Cblk=Cblk, pad=padding)
    out_nhwc = pl.pallas_call(
        kernel,
        out_shape=jax.ShapeDtypeStruct((N, H, W, Cp), f32),
        grid_spec=pltpu.PrefetchScalarGridSpec(
            num_scalar_prefetch=0,
            grid=grid,
            in_specs=[
                pl.BlockSpec((K * K, Cblk), lambda nb, cb: (0, cb)),       # taps
                pl.BlockSpec((1, Cblk), lambda nb, cb: (0, cb)),           # shift
                pl.BlockSpec((Nblk, H, W, Cblk), lambda nb, cb: (nb, 0, 0, cb)),
            ],
            out_specs=pl.BlockSpec((Nblk, H, W, Cblk),
                                   lambda nb, cb: (nb, 0, 0, cb)),
            scratch_shapes=[pltpu.VMEM((Nblk, Hp, Wp, Cblk), f32)],
        ),
        compiler_params=pltpu.CompilerParams(
            dimension_semantics=("parallel", "parallel")),
        cost_estimate=pl.CostEstimate(
            flops=2 * K * K * N * Cp * H * W,
            transcendentals=0,
            bytes_accessed=2 * N * H * W * Cp * 4 + K * K * Cp * 4),
    )(w_taps, shift2d, x_nhwc)

    # Back to NCHW, drop channel padding.
    return jnp.transpose(out_nhwc[..., :C], (0, 3, 1, 2))


def _reference(x, weight, conv_bias, gamma, beta, run_mean, run_var,
               eps=1e-5, padding=1):
    C = x.shape[1]
    y = jax.lax.conv_general_dilated(
        x, weight, window_strides=(1, 1),
        padding=[(padding, padding), (padding, padding)],
        dimension_numbers=("NCHW", "OIHW", "NCHW"),
        feature_group_count=C)
    y = y + conv_bias[None, :, None, None]
    y = (y - run_mean[None, :, None, None]) * (
        gamma[None, :, None, None] / jnp.sqrt(run_var + eps)[None, :, None, None])
    return y + beta[None, :, None, None]


if __name__ == "__main__":
    N, C, H, W, K = 2, 4, 16, 16, 3

    key = jax.random.PRNGKey(0)
    kx, kw, kb, kg, kbe, km, kv = jax.random.split(key, 7)

    x = jax.random.normal(kx, (N, C, H, W), jnp.float32)
    weight = jax.random.normal(kw, (C, 1, K, K), jnp.float32) * 0.1
    conv_bias = jax.random.normal(kb, (C,), jnp.float32) * 0.1
    gamma = 1.0 + 0.1 * jax.random.normal(kg, (C,), jnp.float32)
    beta = 0.1 * jax.random.normal(kbe, (C,), jnp.float32)
    run_mean = 0.1 * jax.random.normal(km, (C,), jnp.float32)
    run_var = jax.random.uniform(kv, (C,), jnp.float32, 0.5, 1.5)

    out = depthwise_conv_bn(x, weight, conv_bias, gamma, beta, run_mean, run_var)
    out = jax.block_until_ready(out)

    ref = _reference(x, weight, conv_bias, gamma, beta, run_mean, run_var)
    if not jnp.allclose(out, ref, atol=1e-4, rtol=1e-4):
        raise AssertionError("Pallas kernel output mismatch vs JAX reference")

    print("KERNEL_OK")
</pallas_src>

<mosaic_0001>
module attributes {stable_mosaic.version = 11 : i64} {
  func.func @_dwconv_bn_kernel(%arg0: i32, %arg1: i32, %arg2: memref<9x128xf32, #tpu.memory_space<vmem>>, %arg3: memref<1x128xf32, #tpu.memory_space<vmem>>, %arg4: memref<2x16x16x128xf32, #tpu.memory_space<vmem>>, %arg5: memref<2x16x16x128xf32, #tpu.memory_space<vmem>>, %arg6: memref<2x18x18x128xf32, #tpu.memory_space<vmem>>) attributes {dimension_semantics = [#tpu.dimension_semantics<parallel>, #tpu.dimension_semantics<parallel>], iteration_bounds = array<i64: 1, 1>, scalar_prefetch = 0 : i64, scratch_operands = 1 : i64, tpu.core_type = #tpu.core_type<tc>, window_params = [{transform_indices = @transform_0, window_bounds = array<i64: 9, 128>}, {transform_indices = @transform_1, window_bounds = array<i64: 1, 128>}, {transform_indices = @transform_2, window_bounds = array<i64: 2, 16, 16, 128>}, {transform_indices = @transform_3, window_bounds = array<i64: 2, 16, 16, 128>}]} {
    %cst = arith.constant 0.000000e+00 : f32
    %0 = vector.broadcast %cst : f32 to vector<2x18x18x128xf32>
    %c0 = arith.constant 0 : index
    %c0_0 = arith.constant 0 : index
    %c0_1 = arith.constant 0 : index
    %c0_2 = arith.constant 0 : index
    %1 = vector.load %arg6[%c0, %c0_0, %c0_1, %c0_2] : memref<2x18x18x128xf32, #tpu.memory_space<vmem>>, vector<2x18x18x128xf32>
    tpu.vector_store %arg6[%c0, %c0_0, %c0_1, %c0_2], %0 {strides = array<i32>} : memref<2x18x18x128xf32, #tpu.memory_space<vmem>>, vector<2x18x18x128xf32>,
    %c0_3 = arith.constant 0 : index
    %c0_4 = arith.constant 0 : index
    %c0_5 = arith.constant 0 : index
    %c0_6 = arith.constant 0 : index
    %2 = vector.load %arg4[%c0_3, %c0_4, %c0_5, %c0_6] : memref<2x16x16x128xf32, #tpu.memory_space<vmem>>, vector<2x16x16x128xf32>
    %c0_7 = arith.constant 0 : index
    %c1 = arith.constant 1 : index
    %c1_8 = arith.constant 1 : index
    %c0_9 = arith.constant 0 : index
    %3 = vector.load %arg6[%c0_7, %c1, %c1_8, %c0_9] : memref<2x18x18x128xf32, #tpu.memory_space<vmem>>, vector<2x16x16x128xf32>
    tpu.vector_store %arg6[%c0_7, %c1, %c1_8, %c0_9], %2 {strides = array<i32>} : memref<2x18x18x128xf32, #tpu.memory_space<vmem>>, vector<2x16x16x128xf32>,
    %cst_10 = arith.constant 0.000000e+00 : f32
    %4 = vector.broadcast %cst_10 : f32 to vector<2x16x16x128xf32>
    %c0_11 = arith.constant 0 : index
    %c0_12 = arith.constant 0 : index
    %c0_13 = arith.constant 0 : index
    %c0_14 = arith.constant 0 : index
    %5 = vector.load %arg6[%c0_11, %c0_12, %c0_13, %c0_14] : memref<2x18x18x128xf32, #tpu.memory_space<vmem>>, vector<2x16x16x128xf32>
    %c0_15 = arith.constant 0 : index
    %c0_16 = arith.constant 0 : index
    %6 = vector.load %arg2[%c0_15, %c0_16] : memref<9x128xf32, #tpu.memory_space<vmem>>, vector<1x128xf32>
    %7 = vector.shape_cast %6 : vector<1x128xf32> to vector<1x1x1x128xf32>
    %8 = vector.broadcast %7 : vector<1x1x1x128xf32> to vector<2x16x16x128xf32>
    %9 = arith.mulf %5, %8 : vector<2x16x16x128xf32>
    %10 = arith.addf %4, %9 : vector<2x16x16x128xf32>
    %c0_17 = arith.constant 0 : index
    %c0_18 = arith.constant 0 : index
    %c1_19 = arith.constant 1 : index
    %c0_20 = arith.constant 0 : index
    %11 = vector.load %arg6[%c0_17, %c0_18, %c1_19, %c0_20] : memref<2x18x18x128xf32, #tpu.memory_space<vmem>>, vector<2x16x16x128xf32>
    %c1_21 = arith.constant 1 : index
    %c0_22 = arith.constant 0 : index
    %12 = vector.load %arg2[%c1_21, %c0_22] : memref<9x128xf32, #tpu.memory_space<vmem>>, vector<1x128xf32>
    %13 = vector.shape_cast %12 : vector<1x128xf32> to vector<1x1x1x128xf32>
    %14 = vector.broadcast %13 : vector<1x1x1x128xf32> to vector<2x16x16x128xf32>
    %15 = arith.mulf %11, %14 : vector<2x16x16x128xf32>
    %16 = arith.addf %10, %15 : vector<2x16x16x128xf32>
    %c0_23 = arith.constant 0 : index
    %c0_24 = arith.constant 0 : index
    %c2 = arith.constant 2 : index
    %c0_25 = arith.constant 0 : index
    %17 = vector.load %arg6[%c0_23, %c0_24, %c2, %c0_25] : memref<2x18x18x128xf32, #tpu.memory_space<vmem>>, vector<2x16x16x128xf32>
    %c2_26 = arith.constant 2 : index
    %c0_27 = arith.constant 0 : index
    %18 = vector.load %arg2[%c2_26, %c0_27] : memref<9x128xf32, #tpu.memory_space<vmem>>, vector<1x128xf32>
    %19 = vector.shape_cast %18 : vector<1x128xf32> to vector<1x1x1x128xf32>
    %20 = vector.broadcast %19 : vector<1x1x1x128xf32> to vector<2x16x16x128xf32>
    %21 = arith.mulf %17, %20 : vector<2x16x16x128xf32>
    %22 = arith.addf %16, %21 : vector<2x16x16x128xf32>
    %c0_28 = arith.constant 0 : index
    %c1_29 = arith.constant 1 : index
    %c0_30 = arith.constant 0 : index
    %c0_31 = arith.constant 0 : index
    %23 = vector.load %arg6[%c0_28, %c1_29, %c0_30, %c0_31] : memref<2x18x18x128xf32, #tpu.memory_space<vmem>>, vector<2x16x16x128xf32>
    %c3 = arith.constant 3 : index
    %c0_32 = arith.constant 0 : index
    %24 = vector.load %arg2[%c3, %c0_32] : memref<9x128xf32, #tpu.memory_space<vmem>>, vector<1x128xf32>
    %25 = vector.shape_cast %24 : vector<1x128xf32> to vector<1x1x1x128xf32>
    %26 = vector.broadcast %25 : vector<1x1x1x128xf32> to vector<2x16x16x128xf32>
    %27 = arith.mulf %23, %26 : vector<2x16x16x128xf32>
    %28 = arith.addf %22, %27 : vector<2x16x16x128xf32>
    %c0_33 = arith.constant 0 : index
    %c1_34 = arith.constant 1 : index
    %c1_35 = arith.constant 1 : index
    %c0_36 = arith.constant 0 : index
    %29 = vector.load %arg6[%c0_33, %c1_34, %c1_35, %c0_36] : memref<2x18x18x128xf32, #tpu.memory_space<vmem>>, vector<2x16x16x128xf32>
    %c4 = arith.constant 4 : index
    %c0_37 = arith.constant 0 : index
    %30 = vector.load %arg2[%c4, %c0_37] : memref<9x128xf32, #tpu.memory_space<vmem>>, vector<1x128xf32>
    %31 = vector.shape_cast %30 : vector<1x128xf32> to vector<1x1x1x128xf32>
    %32 = vector.broadcast %31 : vector<1x1x1x128xf32> to vector<2x16x16x128xf32>
    %33 = arith.mulf %29, %32 : vector<2x16x16x128xf32>
    %34 = arith.addf %28, %33 : vector<2x16x16x128xf32>
    %c0_38 = arith.constant 0 : index
    %c1_39 = arith.constant 1 : index
    %c2_40 = arith.constant 2 : index
    %c0_41 = arith.constant 0 : index
    %35 = vector.load %arg6[%c0_38, %c1_39, %c2_40, %c0_41] : memref<2x18x18x128xf32, #tpu.memory_space<vmem>>, vector<2x16x16x128xf32>
    %c5 = arith.constant 5 : index
    %c0_42 = arith.constant 0 : index
    %36 = vector.load %arg2[%c5, %c0_42] : memref<9x128xf32, #tpu.memory_space<vmem>>, vector<1x128xf32>
    %37 = vector.shape_cast %36 : vector<1x128xf32> to vector<1x1x1x128xf32>
    %38 = vector.broadcast %37 : vector<1x1x1x128xf32> to vector<2x16x16x128xf32>
    %39 = arith.mulf %35, %38 : vector<2x16x16x128xf32>
    %40 = arith.addf %34, %39 : vector<2x16x16x128xf32>
    %c0_43 = arith.constant 0 : index
    %c2_44 = arith.constant 2 : index
    %c0_45 = arith.constant 0 : index
    %c0_46 = arith.constant 0 : index
    %41 = vector.load %arg6[%c0_43, %c2_44, %c0_45, %c0_46] : memref<2x18x18x128xf32, #tpu.memory_space<vmem>>, vector<2x16x16x128xf32>
    %c6 = arith.constant 6 : index
    %c0_47 = arith.constant 0 : index
    %42 = vector.load %arg2[%c6, %c0_47] : memref<9x128xf32, #tpu.memory_space<vmem>>, vector<1x128xf32>
    %43 = vector.shape_cast %42 : vector<1x128xf32> to vector<1x1x1x128xf32>
    %44 = vector.broadcast %43 : vector<1x1x1x128xf32> to vector<2x16x16x128xf32>
    %45 = arith.mulf %41, %44 : vector<2x16x16x128xf32>
    %46 = arith.addf %40, %45 : vector<2x16x16x128xf32>
    %c0_48 = arith.constant 0 : index
    %c2_49 = arith.constant 2 : index
    %c1_50 = arith.constant 1 : index
    %c0_51 = arith.constant 0 : index
    %47 = vector.load %arg6[%c0_48, %c2_49, %c1_50, %c0_51] : memref<2x18x18x128xf32, #tpu.memory_space<vmem>>, vector<2x16x16x128xf32>
    %c7 = arith.constant 7 : index
    %c0_52 = arith.constant 0 : index
    %48 = vector.load %arg2[%c7, %c0_52] : memref<9x128xf32, #tpu.memory_space<vmem>>, vector<1x128xf32>
    %49 = vector.shape_cast %48 : vector<1x128xf32> to vector<1x1x1x128xf32>
    %50 = vector.broadcast %49 : vector<1x1x1x128xf32> to vector<2x16x16x128xf32>
    %51 = arith.mulf %47, %50 : vector<2x16x16x128xf32>
    %52 = arith.addf %46, %51 : vector<2x16x16x128xf32>
    %c0_53 = arith.constant 0 : index
    %c2_54 = arith.constant 2 : index
    %c2_55 = arith.constant 2 : index
    %c0_56 = arith.constant 0 : index
    %53 = vector.load %arg6[%c0_53, %c2_54, %c2_55, %c0_56] : memref<2x18x18x128xf32, #tpu.memory_space<vmem>>, vector<2x16x16x128xf32>
    %c8 = arith.constant 8 : index
    %c0_57 = arith.constant 0 : index
    %54 = vector.load %arg2[%c8, %c0_57] : memref<9x128xf32, #tpu.memory_space<vmem>>, vector<1x128xf32>
    %55 = vector.shape_cast %54 : vector<1x128xf32> to vector<1x1x1x128xf32>
    %56 = vector.broadcast %55 : vector<1x1x1x128xf32> to vector<2x16x16x128xf32>
    %57 = arith.mulf %53, %56 : vector<2x16x16x128xf32>
    %58 = arith.addf %52, %57 : vector<2x16x16x128xf32>
    %c0_58 = arith.constant 0 : index
    %c0_59 = arith.constant 0 : index
    %59 = vector.load %arg3[%c0_58, %c0_59] : memref<1x128xf32, #tpu.memory_space<vmem>>, vector<1x128xf32>
    %60 = vector.shape_cast %59 : vector<1x128xf32> to vector<1x1x1x128xf32>
    %61 = vector.broadcast %60 : vector<1x1x1x128xf32> to vector<2x16x16x128xf32>
    %62 = arith.addf %58, %61 : vector<2x16x16x128xf32>
    %c0_60 = arith.constant 0 : index
    %c0_61 = arith.constant 0 : index
    %c0_62 = arith.constant 0 : index
    %c0_63 = arith.constant 0 : index
    %63 = vector.load %arg5[%c0_60, %c0_61, %c0_62, %c0_63] : memref<2x16x16x128xf32, #tpu.memory_space<vmem>>, vector<2x16x16x128xf32>
    tpu.vector_store %arg5[%c0_60, %c0_61, %c0_62, %c0_63], %62 {strides = array<i32>} : memref<2x16x16x128xf32, #tpu.memory_space<vmem>>, vector<2x16x16x128xf32>,
    return
  }
  func.func @transform_0(%arg0: i32, %arg1: i32) -> (i32, i32) {
    %c0_i32 = arith.constant 0 : i32
    %c0_i32_0 = arith.constant 0 : i32
    return %c0_i32, %arg1 : i32, i32
  }
  func.func @transform_1(%arg0: i32, %arg1: i32) -> (i32, i32) {
    %c0_i32 = arith.constant 0 : i32
    %c0_i32_0 = arith.constant 0 : i32
    return %c0_i32, %arg1 : i32, i32
  }
  func.func @transform_2(%arg0: i32, %arg1: i32) -> (i32, i32, i32, i32) {
    %c0_i32 = arith.constant 0 : i32
    %c0_i32_0 = arith.constant 0 : i32
    %c0_i32_1 = arith.constant 0 : i32
    return %arg0, %c0_i32, %c0_i32_0, %arg1 : i32, i32, i32, i32
  }
  func.func @transform_3(%arg0: i32, %arg1: i32) -> (i32, i32, i32, i32) {
    %c0_i32 = arith.constant 0 : i32
    %c0_i32_0 = arith.constant 0 : i32
    %c0_i32_1 = arith.constant 0 : i32
    return %arg0, %c0_i32, %c0_i32_0, %arg1 : i32, i32, i32, i32
  }
}

</mosaic_0001>

<bundles_post_ra>
// kernel: tpu_custom_call.1
= control target key start
LH: loop header
LB: loop body
LE: loop exit
PB: predicated region body
PF: predicated region fallthrough
CT: control target
= control target key end

     0   :  { %8 = vsyncpa [#allocation4], 0  ;;  %s3579_s0 = inlined_call_operand.hbm [shape: f32[9,128], index: 0, kind: input, shape index: {}]   ;;  %s3580_s1 = inlined_call_operand.vmem [shape: f32[1,128], index: 1, kind: input, shape index: {}]   ;;  %s3581_s2 = inlined_call_operand.hbm [shape: f32[2,16,16,128], index: 2, kind: input, shape index: {}]   ;;  %s3582_s3 = inlined_call_operand.hbm [shape: f32[2,16,16,128], index: 3, kind: output, shape index: {}]  }
   0x1   :  { %9 = vsyncpa [#allocation7], 0 }
   0x2   :  { %10 = vsyncpa [#allocation5], 0  ;;  %s2317_s12 = smov [#allocation3]   ;;  %s2245_s16 = scalar_lea.hbm %s3579_s0, 256 }
   0x3   :  { %s16_s13 = sshll.u32 %s2317_s12, 4  ;;  %p2246_p0 = scmp.ne.s32.totalorder %s3579_s0, %s2245_s16  ;;  %s17_s13 = int_to_ptr.vmem [resolvable:$true] %s16_s13 }
   0x4   :  { %p2249_p1 = scmp.lt.u32.totalorder %s2245_s16, %s3579_s0 }
   0x6   :  { %p2251_p2 = pnand %p2249_p1, %p2246_p0 }
   0x8   :  { %2254 = shalt.err (!%p2251_p2)
}
   0x9   :  { %s2255_s21 = scalar_lea.vmem %s17_s13, 256  ;;  %p2260_p4 = scmp.lt.s32.totalorder %s17_s13, %s17_s13 }
   0xa   :  { %p2256_p3 = scmp.ne.s32.totalorder %s17_s13, %s2255_s21  ;;  %p2261_p5 = scmp.lt.s32.totalorder %s2255_s21, %s2255_s21 }
   0xc   :  { %p2262_p6 = por %p2261_p5, %p2260_p4 }
   0xe   :  { %p2263_p7 = pnand %p2262_p6, %p2256_p3 }
  0x10   :  { %2266 = shalt.err (!%p2263_p7)
}
  0x11   :  { %s2318_s22 = smov 128   ;;  %s2319_s23 = smov 8  }
  0x12   :  { %22 = dma.hbm_to_vmem [thread:$0]  %s3579_s0, 256, %s17_s13, [#allocation4], %s2318_s22, %s2318_s22, %s2319_s23  }
  0x13   :  { %s2320_s26 = smov [#allocation6]   ;;  %s2267_s30 = scalar_lea.hbm %s3581_s2, 8192 }
  0x14   :  { %s30_s27 = sshll.u32 %s2320_s26, 4  ;;  %p2268_p8 = scmp.ne.s32.totalorder %s3581_s2, %s2267_s30  ;;  %s31_s27 = int_to_ptr.vmem [resolvable:$true] %s30_s27 }
  0x15   :  { %p2271_p9 = scmp.lt.u32.totalorder %s2267_s30, %s3581_s2 }
  0x17   :  { %p2273_p10 = pnand %p2271_p9, %p2268_p8 }
  0x19   :  { %2276 = shalt.err (!%p2273_p10)
}
  0x1a   :  { %s2277_s8 = scalar_lea.vmem %s31_s27, 8192  ;;  %p2282_p12 = scmp.lt.s32.totalorder %s31_s27, %s31_s27 }
  0x1b   :  { %p2278_p11 = scmp.ne.s32.totalorder %s31_s27, %s2277_s8  ;;  %p2283_p13 = scmp.lt.s32.totalorder %s2277_s8, %s2277_s8 }
  0x1d   :  { %p2284_p0 = por %p2283_p13, %p2282_p12 }
  0x1f   :  { %p2285_p1 = pnand %p2284_p0, %p2278_p11 }
  0x21   :  { %2288 = shalt.err (!%p2285_p1)
}
  0x22   :  { %36 = dma.hbm_to_vmem [thread:$0]  %s3581_s2, 8192, %s31_s27, [#allocation7], %s2318_s22, %s2318_s22, %s2319_s23  }
  0x23   :  { %2311 = dma.done.wait [#allocation4], 256  }
  0x24   :  { %2312 = vsyncadd [#allocation4], 4294967040 }
  0x25   :  { %2313 = dma.done.wait [#allocation7], 8192  }
  0x26   :  { %2314 = vsyncadd [#allocation7], 4294959104  ;;  %v2321_v0 = vmov 0.0   ;;  %v2481_v1 = vld [vmem:[#allocation6] sm:$0xff]  ;;  %v2483_v2 = vld [vmem:[#allocation6 + $0x8] sm:$0xff] }
  0x27   :  { %43 = vst [vmem:[#allocation2] sm:$0xff] %v2321_v0  ;;  %44 = vst [vmem:[#allocation2 + $0x8] sm:$0xff] %v2321_v0  ;;  %v2485_v3 = vld [vmem:[#allocation6 + $0x10] sm:$0xff]  ;;  %v2490_v4 = vld [vmem:[#allocation6 + $0x18] sm:$0xff] }
  0x28   :  { %45 = vst [vmem:[#allocation2 + $0x10] sm:$0x3] %v2321_v0  ;;  %46 = vst [vmem:[#allocation2 + $0x18] sm:$0xff] %v2321_v0  ;;  %v2492_v5 = vld [vmem:[#allocation6 + $0x20] sm:$0xff]  ;;  %v2494_v6 = vld [vmem:[#allocation6 + $0x28] sm:$0xff] }
  0x29   :  { %47 = vst [vmem:[#allocation2 + $0x20] sm:$0xff] %v2321_v0  ;;  %48 = vst [vmem:[#allocation2 + $0x28] sm:$0x3] %v2321_v0  ;;  %v2499_v7 = vld [vmem:[#allocation6 + $0x30] sm:$0xff]  ;;  %v2501_v8 = vld [vmem:[#allocation6 + $0x38] sm:$0xff] }
  0x2a   :  { %49 = vst [vmem:[#allocation2 + $0x30] sm:$0xff] %v2321_v0  ;;  %50 = vst [vmem:[#allocation2 + $0x38] sm:$0xff] %v2321_v0  ;;  %v2503_v9 = vld [vmem:[#allocation6 + $0x40] sm:$0xff]  ;;  %v2508_v10 = vld [vmem:[#allocation6 + $0x48] sm:$0xff] }
  0x2b   :  { %51 = vst [vmem:[#allocation2 + $0x40] sm:$0x3] %v2321_v0  ;;  %52 = vst [vmem:[#allocation2 + $0x48] sm:$0xff] %v2321_v0  ;;  %v2510_v11 = vld [vmem:[#allocation6 + $0x50] sm:$0xff]  ;;  %v2512_v12 = vld [vmem:[#allocation6 + $0x58] sm:$0xff] }
  0x2c   :  { %53 = vst [vmem:[#allocation2 + $0x50] sm:$0xff] %v2321_v0  ;;  %54 = vst [vmem:[#allocation2 + $0x58] sm:$0x3] %v2321_v0  ;;  %v2517_v13 = vld [vmem:[#allocation6 + $0x60] sm:$0xff]  ;;  %v2519_v14 = vld [vmem:[#allocation6 + $0x68] sm:$0xff] }
  0x2d   :  { %55 = vst [vmem:[#allocation2 + $0x60] sm:$0xff] %v2321_v0  ;;  %56 = vst [vmem:[#allocation2 + $0x68] sm:$0xff] %v2321_v0  ;;  %v165_v15 = vld [vmem:[#allocation6 + $0x70] sm:$0xff]  ;;  %v166_v16 = vld [vmem:[#allocation6 + $0x78] sm:$0xff] }
  0x2e   :  { %57 = vst [vmem:[#allocation2 + $0x70] sm:$0x3] %v2321_v0  ;;  %58 = vst [vmem:[#allocation2 + $0x78] sm:$0xff] %v2321_v0  ;;  %v167_v17 = vld [vmem:[#allocation6 + $0x80] sm:$0xff]  ;;  %v168_v18 = vld [vmem:[#allocation6 + $0x88] sm:$0xff] }
  0x2f   :  { %59 = vst [vmem:[#allocation2 + $0x80] sm:$0xff] %v2321_v0  ;;  %60 = vst [vmem:[#allocation2 + $0x88] sm:$0x3] %v2321_v0  ;;  %v169_v19 = vld [vmem:[#allocation6 + $0x90] sm:$0xff]  ;;  %v170_v20 = vld [vmem:[#allocation6 + $0x98] sm:$0xff] }
  0x30   :  { %61 = vst [vmem:[#allocation2 + $0x90] sm:$0xff] %v2321_v0  ;;  %62 = vst [vmem:[#allocation2 + $0x98] sm:$0xff] %v2321_v0  ;;  %v171_v21 = vld [vmem:[#allocation6 + $0xa0] sm:$0xff]  ;;  %v172_v22 = vld [vmem:[#allocation6 + $0xa8] sm:$0xff] }
  0x31   :  { %63 = vst [vmem:[#allocation2 + $0xa0] sm:$0x3] %v2321_v0  ;;  %64 = vst [vmem:[#allocation2 + $0xa8] sm:$0xff] %v2321_v0  ;;  %v173_v23 = vld [vmem:[#allocation6 + $0xb0] sm:$0xff]  ;;  %v174_v24 = vld [vmem:[#allocation6 + $0xb8] sm:$0xff] }
  0x32   :  { %65 = vst [vmem:[#allocation2 + $0xb0] sm:$0xff] %v2321_v0  ;;  %66 = vst [vmem:[#allocation2 + $0xb8] sm:$0x3] %v2321_v0  ;;  %v175_v25 = vld [vmem:[#allocation6 + $0xc0] sm:$0xff]  ;;  %v176_v26 = vld [vmem:[#allocation6 + $0xc8] sm:$0xff] }
  0x33   :  { %67 = vst [vmem:[#allocation2 + $0xc0] sm:$0xff] %v2321_v0  ;;  %68 = vst [vmem:[#allocation2 + $0xc8] sm:$0xff] %v2321_v0  ;;  %v177_v27 = vld [vmem:[#allocation6 + $0xd0] sm:$0xff]  ;;  %v178_v28 = vld [vmem:[#allocation6 + $0xd8] sm:$0xff] }
  0x34   :  { %69 = vst [vmem:[#allocation2 + $0xd0] sm:$0x3] %v2321_v0  ;;  %70 = vst [vmem:[#allocation2 + $0xd8] sm:$0xff] %v2321_v0  ;;  %v179_v29 = vld [vmem:[#allocation6 + $0xe0] sm:$0xff]  ;;  %v180_v30 = vld [vmem:[#allocation6 + $0xe8] sm:$0xff] }
  0x35   :  { %71 = vst [vmem:[#allocation2 + $0xe0] sm:$0xff] %v2321_v0  ;;  %72 = vst [vmem:[#allocation2 + $0xe8] sm:$0x3] %v2321_v0  ;;  %v2523_v31 = vld [vmem:[#allocation6 + $0x100] sm:$0xff]  ;;  %v2525_v32 = vld [vmem:[#allocation6 + $0x108] sm:$0xff] }
  0x36   :  { %73 = vst [vmem:[#allocation2 + $0xf0] sm:$0xff] %v2321_v0  ;;  %74 = vst [vmem:[#allocation2 + $0xf8] sm:$0xff] %v2321_v0  ;;  %v2527_v33 = vld [vmem:[#allocation6 + $0x110] sm:$0xff]  ;;  %v2532_v34 = vld [vmem:[#allocation6 + $0x118] sm:$0xff] }
  0x37   :  { %75 = vst [vmem:[#allocation2 + $0x100] sm:$0x3] %v2321_v0  ;;  %76 = vst [vmem:[#allocation2 + $0x108] sm:$0xff] %v2321_v0  ;;  %v187_v35 = vld [vmem:[#allocation6 + $0x120] sm:$0xff]  ;;  %v188_v36 = vld [vmem:[#allocation6 + $0x128] sm:$0xff] }
  0x38   :  { %77 = vst [vmem:[#allocation2 + $0x110] sm:$0xff] %v2321_v0  ;;  %78 = vst [vmem:[#allocation2 + $0x118] sm:$0x3] %v2321_v0  ;;  %v189_v37 = vld [vmem:[#allocation6 + $0x130] sm:$0xff]  ;;  %v190_v38 = vld [vmem:[#allocation6 + $0x138] sm:$0xff] }
  0x39   :  { %79 = vst [vmem:[#allocation2 + $0x120] sm:$0xff] %v2321_v0  ;;  %80 = vst [vmem:[#allocation2 + $0x128] sm:$0xff] %v2321_v0  ;;  %v191_v39 = vld [vmem:[#allocation6 + $0x140] sm:$0xff]  ;;  %v192_v40 = vld [vmem:[#allocation6 + $0x148] sm:$0xff] }
  0x3a   :  { %81 = vst [vmem:[#allocation2 + $0x130] sm:$0x3] %v2321_v0  ;;  %82 = vst [vmem:[#allocation2 + $0x138] sm:$0xff] %v2321_v0  ;;  %v193_v41 = vld [vmem:[#allocation6 + $0x150] sm:$0xff]  ;;  %v194_v42 = vld [vmem:[#allocation6 + $0x158] sm:$0xff] }
  0x3b   :  { %83 = vst [vmem:[#allocation2 + $0x140] sm:$0xff] %v2321_v0  ;;  %84 = vst [vmem:[#allocation2 + $0x148] sm:$0x3] %v2321_v0  ;;  %v195_v43 = vld [vmem:[#allocation6 + $0x160] sm:$0xff]  ;;  %v196_v44 = vld [vmem:[#allocation6 + $0x168] sm:$0xff] }
  0x3c   :  { %85 = vst [vmem:[#allocation2 + $0x150] sm:$0xff] %v2321_v0  ;;  %86 = vst [vmem:[#allocation2 + $0x158] sm:$0xff] %v2321_v0  ;;  %v197_v45 = vld [vmem:[#allocation6 + $0x170] sm:$0xff]  ;;  %v198_v46 = vld [vmem:[#allocation6 + $0x178] sm:$0xff] }
  0x3d   :  { %87 = vst [vmem:[#allocation2 + $0x160] sm:$0x3] %v2321_v0  ;;  %88 = vst [vmem:[#allocation2 + $0x168] sm:$0xff] %v2321_v0  ;;  %v199_v47 = vld [vmem:[#allocation6 + $0x180] sm:$0xff]  ;;  %v200_v48 = vld [vmem:[#allocation6 + $0x188] sm:$0xff] }
  0x3e   :  { %89 = vst [vmem:[#allocation2 + $0x170] sm:$0xff] %v2321_v0  ;;  %90 = vst [vmem:[#allocation2 + $0x178] sm:$0x3] %v2321_v0  ;;  %v201_v49 = vld [vmem:[#allocation6 + $0x190] sm:$0xff]  ;;  %v202_v50 = vld [vmem:[#allocation6 + $0x198] sm:$0xff] }
  0x3f   :  { %91 = vst [vmem:[#allocation2 + $0x180] sm:$0xff] %v2321_v0  ;;  %92 = vst [vmem:[#allocation2 + $0x188] sm:$0xff] %v2321_v0  ;;  %v203_v51 = vld [vmem:[#allocation6 + $0x1a0] sm:$0xff]  ;;  %v204_v52 = vld [vmem:[#allocation6 + $0x1a8] sm:$0xff] }
  0x40   :  { %93 = vst [vmem:[#allocation2 + $0x190] sm:$0x3] %v2321_v0  ;;  %94 = vst [vmem:[#allocation2 + $0x198] sm:$0xff] %v2321_v0  ;;  %v205_v53 = vld [vmem:[#allocation6 + $0x1b0] sm:$0xff]  ;;  %v206_v54 = vld [vmem:[#allocation6 + $0x1b8] sm:$0xff] }
  0x41   :  { %95 = vst [vmem:[#allocation2 + $0x1a0] sm:$0xff] %v2321_v0  ;;  %96 = vst [vmem:[#allocation2 + $0x1a8] sm:$0x3] %v2321_v0  ;;  %v207_v55 = vld [vmem:[#allocation6 + $0x1c0] sm:$0xff]  ;;  %v208_v56 = vld [vmem:[#allocation6 + $0x1c8] sm:$0xff] }
  0x42   :  { %97 = vst [vmem:[#allocation2 + $0x1b0] sm:$0xff] %v2321_v0  ;;  %98 = vst [vmem:[#allocation2 + $0x1b8] sm:$0xff] %v2321_v0  ;;  %v209_v57 = vld [vmem:[#allocation6 + $0x1d0] sm:$0xff]  ;;  %v210_v58 = vld [vmem:[#allocation6 + $0x1d8] sm:$0xff] }
  0x43   :  { %99 = vst [vmem:[#allocation2 + $0x1c0] sm:$0x3] %v2321_v0  ;;  %100 = vst [vmem:[#allocation2 + $0x1c8] sm:$0xff] %v2321_v0  ;;  %v211_v59 = vld [vmem:[#allocation6 + $0x1e0] sm:$0xff]  ;;  %v212_v60 = vld [vmem:[#allocation6 + $0x1e8] sm:$0xff] }
  0x44   :  { %101 = vst [vmem:[#allocation2 + $0x1d0] sm:$0xff] %v2321_v0  ;;  %102 = vst [vmem:[#allocation2 + $0x1d8] sm:$0x3] %v2321_v0  ;;  %v181_v61 = vld [vmem:[#allocation6 + $0xf0] sm:$0xff]  ;;  %v182_v62 = vld [vmem:[#allocation6 + $0xf8] sm:$0xff] }
  0x45   :  { %103 = vst [vmem:[#allocation2 + $0x1e0] sm:$0xff] %v2321_v0  ;;  %104 = vst [vmem:[#allocation2 + $0x1e8] sm:$0xff] %v2321_v0  ;;  %v213_v63 = vld [vmem:[#allocation6 + $0x1f0] sm:$0xff] }
  0x46   :  { %105 = vst [vmem:[#allocation2 + $0x1f0] sm:$0x3] %v2321_v0  ;;  %106 = vst [vmem:[#allocation2 + $0x1f8] sm:$0xff] %v2321_v0 }
  0x47   :  { %107 = vst [vmem:[#allocation2 + $0x200] sm:$0xff] %v2321_v0  ;;  %108 = vst [vmem:[#allocation2 + $0x208] sm:$0x3] %v2321_v0 }
  0x48   :  { %109 = vst [vmem:[#allocation2 + $0x210] sm:$0xff] %v2321_v0  ;;  %110 = vst [vmem:[#allocation2 + $0x218] sm:$0xff] %v2321_v0 }
  0x49   :  { %111 = vst [vmem:[#allocation2 + $0x220] sm:$0x3] %v2321_v0  ;;  %112 = vst [vmem:[#allocation2 + $0x228] sm:$0xff] %v2321_v0 }
  0x4a   :  { %113 = vst [vmem:[#allocation2 + $0x230] sm:$0xff] %v2321_v0  ;;  %114 = vst [vmem:[#allocation2 + $0x238] sm:$0x3] %v2321_v0 }
  0x4b   :  { %115 = vst [vmem:[#allocation2 + $0x240] sm:$0xff] %v2321_v0  ;;  %116 = vst [vmem:[#allocation2 + $0x248] sm:$0xff] %v2321_v0 }
  0x4c   :  { %117 = vst [vmem:[#allocation2 + $0x250] sm:$0x3] %v2321_v0  ;;  %118 = vst [vmem:[#allocation2 + $0x258] sm:$0xff] %v2321_v0 }
  0x4d   :  { %119 = vst [vmem:[#allocation2 + $0x260] sm:$0xff] %v2321_v0  ;;  %120 = vst [vmem:[#allocation2 + $0x268] sm:$0x3] %v2321_v0 }
  0x4e   :  { %121 = vst [vmem:[#allocation2 + $0x270] sm:$0xff] %v2321_v0  ;;  %122 = vst [vmem:[#allocation2 + $0x278] sm:$0xff] %v2321_v0 }
  0x4f   :  { %123 = vst [vmem:[#allocation2 + $0x280] sm:$0x3] %v2321_v0  ;;  %124 = vst [vmem:[#allocation2 + $0x288] sm:$0xff] %v2321_v0 }
  0x50   :  { %125 = vst [vmem:[#allocation2 + $0x290] sm:$0xff] %v2321_v0  ;;  %126 = vst [vmem:[#allocation2 + $0x298] sm:$0x3] %v2321_v0 }
  0x51   :  { %127 = vst [vmem:[#allocation2 + $0x2a0] sm:$0xff] %v2321_v0  ;;  %128 = vst [vmem:[#allocation2 + $0x2a8] sm:$0xff] %v2321_v0 }
  0x52   :  { %129 = vst [vmem:[#allocation2 + $0x2b0] sm:$0x3] %v2321_v0  ;;  %130 = vst [vmem:[#allocation2 + $0x2b8] sm:$0xff] %v2321_v0 }
  0x53   :  { %131 = vst [vmem:[#allocation2 + $0x2c0] sm:$0xff] %v2321_v0  ;;  %132 = vst [vmem:[#allocation2 + $0x2c8] sm:$0x3] %v2321_v0 }
  0x54   :  { %133 = vst [vmem:[#allocation2 + $0x2d0] sm:$0xff] %v2321_v0  ;;  %134 = vst [vmem:[#allocation2 + $0x2d8] sm:$0xff] %v2321_v0 }
  0x55   :  { %135 = vst [vmem:[#allocation2 + $0x2e0] sm:$0x3] %v2321_v0  ;;  %136 = vst [vmem:[#allocation2 + $0x2e8] sm:$0xff] %v2321_v0 }
  0x56   :  { %137 = vst [vmem:[#allocation2 + $0x2f0] sm:$0xff] %v2321_v0  ;;  %138 = vst [vmem:[#allocation2 + $0x2f8] sm:$0x3] %v2321_v0 }
  0x57   :  { %139 = vst [vmem:[#allocation2 + $0x300] sm:$0xff] %v2321_v0  ;;  %140 = vst [vmem:[#allocation2 + $0x308] sm:$0xff] %v2321_v0 }
  0x58   :  { %141 = vst [vmem:[#allocation2 + $0x310] sm:$0x3] %v2321_v0  ;;  %142 = vst [vmem:[#allocation2 + $0x318] sm:$0xff] %v2321_v0 }
  0x59   :  { %143 = vst [vmem:[#allocation2 + $0x320] sm:$0xff] %v2321_v0  ;;  %144 = vst [vmem:[#allocation2 + $0x328] sm:$0x3] %v2321_v0 }
  0x5a   :  { %145 = vst [vmem:[#allocation2 + $0x330] sm:$0xff] %v2321_v0  ;;  %146 = vst [vmem:[#allocation2 + $0x338] sm:$0xff] %v2321_v0 }
  0x5b   :  { %147 = vst [vmem:[#allocation2 + $0x340] sm:$0x3] %v2321_v0  ;;  %148 = vst [vmem:[#allocation2 + $0x348] sm:$0xff] %v2321_v0 }
  0x5c   :  { %149 = vst [vmem:[#allocation2 + $0x350] sm:$0xff] %v2321_v0  ;;  %150 = vst [vmem:[#allocation2 + $0x358] sm:$0x3] %v2321_v0  ;;  %v214_v0 = vld [vmem:[#allocation6 + $0x1f8] sm:$0xff] }
  0x5d   :  { %216 = vst [vmem:[#allocation2 + $0x19] sm:$0xff] %v2481_v1  ;;  %217 = vst [vmem:[#allocation2 + $0x21] sm:$0xff] %v2483_v2 }
  0x5e   :  { %218 = vst [vmem:[#allocation2 + $0x31] sm:$0xff] %v2485_v3  ;;  %219 = vst [vmem:[#allocation2 + $0x39] sm:$0xff] %v2490_v4 }
  0x5f   :  { %220 = vst [vmem:[#allocation2 + $0x49] sm:$0xff] %v2492_v5  ;;  %221 = vst [vmem:[#allocation2 + $0x51] sm:$0xff] %v2494_v6 }
  0x60   :  { %222 = vst [vmem:[#allocation2 + $0x61] sm:$0xff] %v2499_v7  ;;  %223 = vst [vmem:[#allocation2 + $0x69] sm:$0xff] %v2501_v8 }
  0x61   :  { %224 = vst [vmem:[#allocation2 + $0x79] sm:$0xff] %v2503_v9  ;;  %3591 = vst [vmem:[#allocation12_spill] sm:$0xff] %v2508_v10 }
  0x62   :  { %3592 = vst [vmem:[#allocation13_spill] sm:$0xff] %v2510_v11  ;;  %3593 = vst [vmem:[#allocation14_spill] sm:$0xff] %v2512_v12 }
  0x63   :  { %225 = vst [vmem:[#allocation2 + $0x81] sm:$0xff] %v2508_v10  ;;  %226 = vst [vmem:[#allocation2 + $0x91] sm:$0xff] %v2510_v11 }
  0x64   :  { %227 = vst [vmem:[#allocation2 + $0x99] sm:$0xff] %v2512_v12  ;;  %3594 = vst [vmem:[#allocation15_spill] sm:$0xff] %v2517_v13 }
  0x65   :  { %3595 = vst [vmem:[#allocation16_spill] sm:$0xff] %v2519_v14  ;;  %228 = vst [vmem:[#allocation2 + $0xa9] sm:$0xff] %v2517_v13 }
  0x66   :  { %229 = vst [vmem:[#allocation2 + $0xb1] sm:$0xff] %v2519_v14  ;;  %230 = vst [vmem:[#allocation2 + $0xc1] sm:$0xff] %v165_v15  ;;  %v2535_v15 = vld [vmem:[#allocation3] ss:$0 sm:$0xff] }
  0x67   :  { %231 = vst [vmem:[#allocation2 + $0xc9] sm:$0xff] %v166_v16  ;;  %232 = vst [vmem:[#allocation2 + $0xd9] sm:$0xff] %v167_v17  ;;  %v477_v16 = vld [vmem:[#allocation2 + $0x1] sm:$0xff]  ;;  %v2538_v17 = vmul.f32 0.0, %v2535_v15 }
  0x68   :  { %233 = vst [vmem:[#allocation2 + $0xe1] sm:$0xff] %v168_v18  ;;  %234 = vst [vmem:[#allocation2 + $0xf1] sm:$0xff] %v169_v19  ;;  %v2540_v18 = vld [vmem:[#allocation3 + $0x1] ss:$0 sm:$0xff]  ;;  %v674_v19 = vld [vmem:[#allocation2 + $0x2] sm:$0xff] }
  0x69   :  { %235 = vst [vmem:[#allocation2 + $0xf9] sm:$0xff] %v170_v20  ;;  %236 = vst [vmem:[#allocation2 + $0x109] sm:$0xff] %v171_v21  ;;  %v2542_v20 = vld [vmem:[#allocation3 + $0x2] ss:$0 sm:$0xff]  ;;  %v546_v21 = vmul.f32 %v2540_v18, %v477_v16 }
  0x6a   :  { %237 = vst [vmem:[#allocation2 + $0x111] sm:$0xff] %v172_v22  ;;  %238 = vst [vmem:[#allocation2 + $0x121] sm:$0xff] %v173_v23  ;;  %v743_v22 = vmul.f32 %v2542_v20, %v674_v19  ;;  %v871_v23 = vld [vmem:[#allocation2 + $0x18] sm:$0xff] }
  0x6b   :  { %239 = vst [vmem:[#allocation2 + $0x129] sm:$0xff] %v174_v24  ;;  %240 = vst [vmem:[#allocation2 + $0x139] sm:$0xff] %v175_v25  ;;  %v2546_v24 = vld [vmem:[#allocation3 + $0x3] ss:$0 sm:$0xff]  ;;  %v2548_v25 = vld [vmem:[#allocation3 + $0x4] ss:$0 sm:$0xff] }
  0x6c   :  { %241 = vst [vmem:[#allocation2 + $0x141] sm:$0xff] %v176_v26  ;;  %242 = vst [vmem:[#allocation2 + $0x151] sm:$0xff] %v177_v27  ;;  %v2550_v26 = vld [vmem:[#allocation2 + $0x1a] sm:$0xff]  ;;  %v2552_v27 = vld [vmem:[#allocation3 + $0x5] ss:$0 sm:$0xff] }
  0x6d   :  { %243 = vst [vmem:[#allocation2 + $0x159] sm:$0xff] %v178_v28  ;;  %244 = vst [vmem:[#allocation2 + $0x169] sm:$0xff] %v179_v29  ;;  %v2554_v28 = vld [vmem:[#allocation2 + $0x30] sm:$0xff]  ;;  %v548_v29 = vmul.f32 %v2540_v18, %v2481_v1 }
  0x6e   :  { %245 = vst [vmem:[#allocation2 + $0x171] sm:$0xff] %v180_v30  ;;  %248 = vst [vmem:[#allocation2 + $0x1c9] sm:$0xff] %v2523_v31  ;;  %v2560_v30 = vmul.f32 %v2540_v18, %v2483_v2 }
  0x6f   :  { %249 = vst [vmem:[#allocation2 + $0x1d1] sm:$0xff] %v2525_v32  ;;  %250 = vst [vmem:[#allocation2 + $0x1e1] sm:$0xff] %v2527_v33 }
  0x70   :  { %251 = vst [vmem:[#allocation2 + $0x1e9] sm:$0xff] %v2532_v34  ;;  %252 = vst [vmem:[#allocation2 + $0x1f9] sm:$0xff] %v187_v35  ;;  %v610_v35 = vadd.f32 %v546_v21, %v2538_v17 }
  0x71   :  { %253 = vst [vmem:[#allocation2 + $0x201] sm:$0xff] %v188_v36  ;;  %254 = vst [vmem:[#allocation2 + $0x211] sm:$0xff] %v189_v37  ;;  %v940_v36 = vmul.f32 %v2546_v24, %v871_v23  ;;  %v1137_v37 = vmul.f32 %v2548_v25, %v2481_v1  ;;  %v2584_v1 = vmul.f32 %v2548_v25, %v2525_v32 }
  0x72   :  { %255 = vst [vmem:[#allocation2 + $0x219] sm:$0xff] %v190_v38  ;;  %256 = vst [vmem:[#allocation2 + $0x229] sm:$0xff] %v191_v39  ;;  %v2566_v38 = vld [vmem:[#allocation3 + $0x6] ss:$0 sm:$0xff]  ;;  %v2568_v39 = vld [vmem:[#allocation2 + $0x32] sm:$0xff] }
  0x73   :  { %257 = vst [vmem:[#allocation2 + $0x231] sm:$0xff] %v192_v40  ;;  %258 = vst [vmem:[#allocation2 + $0x241] sm:$0xff] %v193_v41  ;;  %v1138_v40 = vmul.f32 %v2548_v25, %v2483_v2  ;;  %v1334_v41 = vmul.f32 %v2552_v27, %v2550_v26  ;;  %v1532_v2 = vmul.f32 %v2566_v38, %v2554_v28 }
  0x74   :  { %259 = vst [vmem:[#allocation2 + $0x249] sm:$0xff] %v194_v42  ;;  %260 = vst [vmem:[#allocation2 + $0x259] sm:$0xff] %v195_v43  ;;  %v2574_v42 = vld [vmem:[#allocation3 + $0x7] ss:$0 sm:$0xff]  ;;  %v2576_v43 = vld [vmem:[#allocation3 + $0x8] ss:$0 sm:$0xff] }
  0x75   :  { %261 = vst [vmem:[#allocation2 + $0x261] sm:$0xff] %v196_v44  ;;  %262 = vst [vmem:[#allocation2 + $0x271] sm:$0xff] %v197_v45  ;;  %v478_v44 = vld [vmem:[#allocation2 + $0x9] sm:$0xff]  ;;  %v2580_v45 = vmul.f32 %v2548_v25, %v2523_v31  ;;  %v1926_v32 = vmul.f32 %v2576_v43, %v2568_v39 }
  0x76   :  { %263 = vst [vmem:[#allocation2 + $0x279] sm:$0xff] %v198_v46  ;;  %264 = vst [vmem:[#allocation2 + $0x289] sm:$0xff] %v199_v47  ;;  %v351_v46 = vmul.f32 %v2535_v15, %v871_v23  ;;  %v807_v47 = vadd.f32 %v743_v22, %v610_v35  ;;  %v2594_v31 = vld [vmem:[#allocation2 + $0x22] sm:$0xff]  ;;  %v1297_v19 = vld [vmem:[#allocation2 + $0x1ca] sm:$0xff] }
  0x77   :  { %265 = vst [vmem:[#allocation2 + $0x291] sm:$0xff] %v200_v48  ;;  %266 = vst [vmem:[#allocation2 + $0x2a1] sm:$0xff] %v201_v49  ;;  %v1729_v48 = vmul.f32 %v2574_v42, %v2485_v3  ;;  %v547_v49 = vmul.f32 %v2540_v18, %v478_v44  ;;  %v1495_v21 = vld [vmem:[#allocation2 + $0x1e0] sm:$0xff]  ;;  %v1298_v11 = vld [vmem:[#allocation2 + $0x1d2] sm:$0xff] }
  0x78   :  { %267 = vst [vmem:[#allocation2 + $0x2a9] sm:$0xff] %v202_v50  ;;  %268 = vst [vmem:[#allocation2 + $0x2b9] sm:$0xff] %v203_v51  ;;  %v675_v50 = vld [vmem:[#allocation2 + $0xa] sm:$0xff]  ;;  %v2592_v51 = vld [vmem:[#allocation2 + $0x20] sm:$0xff]  ;;  %v612_v23 = vadd.f32 %v548_v29, %v351_v46  ;;  %v1366_v46 = vmul.f32 %v2552_v27, %v1297_v19 }
  0x79   :  { %269 = vst [vmem:[#allocation2 + $0x2c1] sm:$0xff] %v204_v52  ;;  %270 = vst [vmem:[#allocation2 + $0x2d1] sm:$0xff] %v205_v53  ;;  %v744_v52 = vmul.f32 %v2542_v20, %v675_v50  ;;  %v2599_v53 = vld [vmem:[#allocation2 + $0x38] sm:$0xff]  ;;  %v1889_v14 = vld [vmem:[#allocation2 + $0x1e2] sm:$0xff] }
  0x7a   :  { %271 = vst [vmem:[#allocation2 + $0x2d9] sm:$0xff] %v206_v54  ;;  %272 = vst [vmem:[#allocation2 + $0x2e9] sm:$0xff] %v207_v55  ;;  %v2603_v54 = vmul.f32 %v2574_v42, %v2490_v4  ;;  %v2605_v55 = vld [vmem:[#allocation2 + $0x3a] sm:$0xff]  ;;  %v1533_v44 = vmul.f32 %v2566_v38, %v2599_v53 }
  0x7b   :  { %273 = vst [vmem:[#allocation2 + $0x2f1] sm:$0xff] %v208_v56  ;;  %274 = vst [vmem:[#allocation2 + $0x301] sm:$0xff] %v209_v57  ;;  %v509_v56 = vld [vmem:[#allocation2 + $0x1b1] sm:$0xff]  ;;  %v2609_v57 = vmul.f32 %v2574_v42, %v2527_v33  ;;  %v510_v22 = vld [vmem:[#allocation2 + $0x1b9] sm:$0xff] }
  0x7c   :  { %275 = vst [vmem:[#allocation2 + $0x309] sm:$0xff] %v210_v58  ;;  %276 = vst [vmem:[#allocation2 + $0x319] sm:$0xff] %v211_v59  ;;  %v1004_v58 = vadd.f32 %v940_v36, %v807_v47  ;;  %v611_v59 = vadd.f32 %v547_v49, %v2538_v17  ;;  %v578_v16 = vmul.f32 %v2540_v18, %v509_v56  ;;  %v707_v47 = vld [vmem:[#allocation2 + $0x1ba] sm:$0xff]  ;;  %v904_v49 = vld [vmem:[#allocation2 + $0x1d0] sm:$0xff] }
  0x7d   :  { %277 = vst [vmem:[#allocation2 + $0x321] sm:$0xff] %v212_v60  ;;  %246 = vst [vmem:[#allocation2 + $0x181] sm:$0xff] %v181_v61  ;;  %v941_v60 = vmul.f32 %v2546_v24, %v2592_v51  ;;  %v706_v61 = vld [vmem:[#allocation2 + $0x1b2] sm:$0xff]  ;;  %v776_v13 = vmul.f32 %v2542_v20, %v707_v47  ;;  %v973_v12 = vmul.f32 %v2546_v24, %v904_v49 }
  0x7e   :  { %247 = vst [vmem:[#allocation2 + $0x189] sm:$0xff] %v182_v62  ;;  %278 = vst [vmem:[#allocation2 + $0x331] sm:$0xff] %v213_v63  ;;  %v903_v62 = vld [vmem:[#allocation2 + $0x1c8] sm:$0xff]  ;;  %v2616_v63 = vmul.f32 %v2574_v42, %v2532_v34  ;;  %v775_v33 = vmul.f32 %v2542_v20, %v706_v61  ;;  %v1201_v35 = vadd.f32 %v1137_v37, %v1004_v58 }
  0x7f   :  { %279 = vst [vmem:[#allocation2 + $0x339] sm:$0xff] %v214_v0  ;;  %v1335_v0 = vmul.f32 %v2552_v27, %v2594_v31  ;;  %v808_v36 = vadd.f32 %v744_v52, %v611_v59  ;;  %v1927_v34 = vmul.f32 %v2576_v43, %v2605_v55  ;;  %v642_v50 = vadd.f32 %v578_v16, %v2538_v17  ;;  %v1496_v16 = vld [vmem:[#allocation2 + $0x1e8] sm:$0xff] }
  0x80   :  { %v972_v56 = vmul.f32 %v2546_v24, %v903_v62  ;;  %v579_v61 = vmul.f32 %v2540_v18, %v510_v22  ;;  %v1398_v29 = vadd.f32 %v1334_v41, %v1201_v35  ;;  %v1564_v52 = vmul.f32 %v2566_v38, %v1495_v21  ;;  %v1890_v41 = vld [vmem:[#allocation2 + $0x1ea] sm:$0xff] }
  0x81   :  { %v1005_v37 = vadd.f32 %v941_v60, %v808_v36  ;;  %v839_v58 = vadd.f32 %v775_v33, %v642_v50  ;;  %v745_v62 = vmul.f32 %v2542_v20, %v2550_v26  ;;  %v1958_v47 = vmul.f32 %v2576_v43, %v1889_v14  ;;  %v2648_v14 = vld [vmem:[%s3580_s1] ss:$0 sm:$0xff] }
  0x82   :  { %v643_v59 = vadd.f32 %v579_v61, %v2538_v17  ;;  %v1596_v10 = vadd.f32 %v1532_v2, %v1398_v29  ;;  %v942_v60 = vmul.f32 %v2546_v24, %v2554_v28  ;;  %v1139_v17 = vmul.f32 %v2548_v25, %v2485_v3  ;;  %v2643_v2 = vld [vmem:[#allocation2 + $0x48] sm:$0xff] }
  0x83   :  { %v1202_v22 = vadd.f32 %v1138_v40, %v1005_v37  ;;  %v1036_v19 = vadd.f32 %v972_v56, %v839_v58  ;;  %v809_v33 = vadd.f32 %v745_v62, %v612_v23  ;;  %v1367_v49 = vmul.f32 %v2552_v27, %v1298_v11  ;;  %v2661_v58 = vld [vmem:[#allocation2 + $0x4a] sm:$0xff] }
  0x84   :  { %v840_v21 = vadd.f32 %v776_v13, %v643_v59  ;;  %v1793_v35 = vadd.f32 %v1729_v48, %v1596_v10  ;;  %v1565_v26 = vmul.f32 %v2566_v38, %v1496_v16  ;;  %v1959_v23 = vmul.f32 %v2576_v43, %v1890_v41 }
  0x85   :  { %v1399_v36 = vadd.f32 %v1335_v0, %v1202_v22  ;;  %v1233_v40 = vadd.f32 %v2580_v45, %v1036_v19  ;;  %v1006_v50 = vadd.f32 %v942_v60, %v809_v33  ;;  %v1336_v11 = vmul.f32 %v2552_v27, %v2568_v39 }
  0x86   :  { %v1037_v13 = vadd.f32 %v973_v12, %v840_v21  ;;  %v1990_v56 = vadd.f32 %v1926_v32, %v1793_v35  ;;  %v352_v48 = vmul.f32 %v2535_v15, %v2592_v51  ;;  %v1534_v37 = vmul.f32 %v2566_v38, %v2643_v2 }
  0x87   :  { %v1597_v10 = vadd.f32 %v1533_v44, %v1399_v36  ;;  %v1430_v0 = vadd.f32 %v1366_v46, %v1233_v40  ;;  %v1203_v29 = vadd.f32 %v1139_v17, %v1006_v50  ;;  %v746_v44 = vmul.f32 %v2542_v20, %v2594_v31 }
  0x88   :  { %v1234_v61 = vadd.f32 %v2584_v1, %v1037_v13  ;;  %v2061_v12 = vadd.f32 %v2648_v14, %v1990_v56  ;;  %v613_v32 = vadd.f32 %v2560_v30, %v352_v48  ;;  %v1731_v1 = vmul.f32 %v2574_v42, %v2492_v5  ;;  %v1860_v56 = vld [vmem:[#allocation2 + $0x52] sm:$0xff] }
  0x89   :  { %v1794_v45 = vadd.f32 %v2603_v54, %v1597_v10  ;;  %v1628_v59 = vadd.f32 %v1564_v52, %v1430_v0  ;;  %v1400_v46 = vadd.f32 %v1336_v11, %v1203_v29  ;;  %v943_v22 = vmul.f32 %v2546_v24, %v2599_v53  ;;  %v2675_v52 = vld [vmem:[#allocation2 + $0x50] sm:$0xff]  ;;  %v1467_v0 = vld [vmem:[#allocation2 + $0x60] sm:$0xff] }
  0x8a   :  { %v1431_v51 = vadd.f32 %v1367_v49, %v1234_v61  ;;  %2125 = vst [vmem:[#allocation8] sm:$0xff] %v2061_v12  ;;  %v810_v62 = vadd.f32 %v746_v44, %v613_v32  ;;  %v1140_v54 = vmul.f32 %v2548_v25, %v2490_v4  ;;  %v1928_v31 = vmul.f32 %v2576_v43, %v2661_v58  ;;  %v2700_v12 = vld [vmem:[#allocation2 + $0x62] sm:$0xff] }
  0x8b   :  { %v1991_v16 = vadd.f32 %v1927_v34, %v1794_v45  ;;  %v1825_v30 = vadd.f32 %v2609_v57, %v1628_v59  ;;  %v1598_v60 = vadd.f32 %v1534_v37, %v1400_v46  ;;  %v353_v34 = vmul.f32 %v2535_v15, %v2554_v28 }
  0x8c   :  { %v1629_v41 = vadd.f32 %v1565_v26, %v1431_v51  ;;  %v1007_v21 = vadd.f32 %v943_v22, %v810_v62  ;;  %v550_v33 = vmul.f32 %v2540_v18, %v2485_v3  ;;  %v1337_v36 = vmul.f32 %v2552_v27, %v2605_v55  ;;  %v2712_v62 = vld [vmem:[#allocation2 + $0x68] sm:$0xff] }
  0x8d   :  { %v2062_v19 = vadd.f32 %v2648_v14, %v1991_v16  ;;  %v2022_v17 = vadd.f32 %v1958_v47, %v1825_v30  ;;  %v1795_v57 = vadd.f32 %v1731_v1, %v1598_v60  ;;  %v1535_v26 = vmul.f32 %v2566_v38, %v2675_v52 }
  0x8e   :  { %v1826_v35 = vadd.f32 %v2616_v63, %v1629_v41  ;;  %v1204_v49 = vadd.f32 %v1140_v54, %v1007_v21  ;;  %v614_v40 = vadd.f32 %v550_v33, %v353_v34  ;;  %v747_v13 = vmul.f32 %v2542_v20, %v2568_v39  ;;  %v1862_v34 = vld [vmem:[#allocation2 + $0x6a] sm:$0xff] }
  0x8f   :  { %2126 = vst [vmem:[#allocation8 + $0x8] sm:$0xff] %v2062_v19  ;;  %v2093_v28 = vadd.f32 %v2648_v14, %v2022_v17  ;;  %v1992_v3 = vadd.f32 %v1928_v31, %v1795_v57  ;;  %v1732_v63 = vmul.f32 %v2574_v42, %v2494_v6  ;;  %v944_v11 = vmul.f32 %v2546_v24, %v2643_v2 }
  0x90   :  { %v2023_v50 = vadd.f32 %v1959_v23, %v1826_v35  ;;  %v1401_v47 = vadd.f32 %v1337_v36, %v1204_v49  ;;  %v811_v10 = vadd.f32 %v747_v13, %v614_v40  ;;  %v1141_v48 = vmul.f32 %v2548_v25, %v2492_v5 }
  0x91   :  { %2157 = vst [vmem:[#allocation8 + $0x100] sm:$0xff] %v2093_v28  ;;  %v2063_v61 = vadd.f32 %v2648_v14, %v1992_v3  ;;  %v354_v23 = vmul.f32 %v2535_v15, %v2599_v53  ;;  %v551_v45 = vmul.f32 %v2540_v18, %v2490_v4  ;;  %v1929_v32 = vmul.f32 %v2576_v43, %v1860_v56 }
  0x92   :  { %v2094_v39 = vadd.f32 %v2648_v14, %v2023_v50  ;;  %v1599_v29 = vadd.f32 %v1535_v26, %v1401_v47  ;;  %v1008_v37 = vadd.f32 %v944_v11, %v811_v10  ;;  %v1338_v44 = vmul.f32 %v2552_v27, %v2661_v58  ;;  %v2733_v26 = vld [vmem:[#allocation2 + $0x78] sm:$0xff] }
  0x93   :  { %2127 = vst [vmem:[#allocation8 + $0x10] sm:$0xff] %v2063_v61  ;;  %v1536_v59 = vmul.f32 %v2566_v38, %v1467_v0  ;;  %v1733_v51 = vmul.f32 %v2574_v42, %v2499_v7  ;;  %v615_v1 = vadd.f32 %v551_v45, %v354_v23  ;;  %v748_v16 = vmul.f32 %v2542_v20, %v2605_v55  ;;  %v2751_v45 = vld [vmem:[#allocation2 + $0x80] sm:$0xff] }
  0x94   :  { %2158 = vst [vmem:[#allocation8 + $0x108] sm:$0xff] %v2094_v39  ;;  %v1796_v53 = vadd.f32 %v1732_v63, %v1599_v29  ;;  %v1205_v46 = vadd.f32 %v1141_v48, %v1008_v37  ;;  %v1930_v4 = vmul.f32 %v2576_v43, %v2700_v12  ;;  %v945_v22 = vmul.f32 %v2546_v24, %v2675_v52  ;;  %v1863_v39 = vld [vmem:[#allocation2 + $0x7a] sm:$0xff] }
  0x95   :  { %v355_v54 = vmul.f32 %v2535_v15, %v2643_v2  ;;  %v552_v30 = vmul.f32 %v2540_v18, %v2492_v5  ;;  %v812_v31 = vadd.f32 %v748_v16, %v615_v1  ;;  %v1142_v55 = vmul.f32 %v2548_v25, %v2494_v6 }
  0x96   :  { %v1993_v41 = vadd.f32 %v1929_v32, %v1796_v53  ;;  %v1402_v60 = vadd.f32 %v1338_v44, %v1205_v46  ;;  %v1339_v19 = vmul.f32 %v2552_v27, %v1860_v56  ;;  %v1537_v21 = vmul.f32 %v2566_v38, %v2712_v62 }
  0x97   :  { %v616_v33 = vadd.f32 %v552_v30, %v355_v54  ;;  %v749_v17 = vmul.f32 %v2542_v20, %v2661_v58  ;;  %v1009_v5 = vadd.f32 %v945_v22, %v812_v31  ;;  %v946_v57 = vmul.f32 %v2546_v24, %v1467_v0  ;;  %v2763_v22 = vld [vmem:[#allocation2 + $0x82] sm:$0xff] }
  0x98   :  { %v2064_v2 = vadd.f32 %v2648_v14, %v1993_v41  ;;  %v1600_v35 = vadd.f32 %v1536_v59, %v1402_v60  ;;  %v1143_v49 = vmul.f32 %v2548_v25, %v2499_v7  ;;  %v356_v40 = vmul.f32 %v2535_v15, %v2675_v52 }
  0x99   :  { %v813_v36 = vadd.f32 %v749_v17, %v616_v33  ;;  %v553_v13 = vmul.f32 %v2540_v18, %v2494_v6  ;;  %v1206_v28 = vadd.f32 %v1142_v55, %v1009_v5  ;;  %v1734_v50 = vmul.f32 %v2574_v42, %v2501_v8 }
  0x9a   :  { %2128 = vst [vmem:[#allocation8 + $0x18] sm:$0xff] %v2064_v2  ;;  %v1797_v58 = vadd.f32 %v1733_v51, %v1600_v35  ;;  %v1931_v3 = vmul.f32 %v2576_v43, %v1862_v34  ;;  %v1340_v47 = vmul.f32 %v2552_v27, %v2700_v12  ;;  %v750_v11 = vmul.f32 %v2542_v20, %v1860_v56 }
  0x9b   :  { %v1010_v63 = vadd.f32 %v946_v57, %v813_v36  ;;  %v617_v10 = vadd.f32 %v553_v13, %v356_v40  ;;  %v1403_v52 = vadd.f32 %v1339_v19, %v1206_v28  ;;  %v1538_v6 = vmul.f32 %v2566_v38, %v2733_v26 }
  0x9c   :  { %v1994_v48 = vadd.f32 %v1930_v4, %v1797_v58  ;;  %v947_v61 = vmul.f32 %v2546_v24, %v2712_v62  ;;  %v1144_v37 = vmul.f32 %v2548_v25, %v2501_v8  ;;  %v357_v32 = vmul.f32 %v2535_v15, %v1467_v0 }
  0x9d   :  { %v1207_v23 = vadd.f32 %v1143_v49, %v1010_v63  ;;  %v814_v29 = vadd.f32 %v750_v11, %v617_v10  ;;  %v1601_v44 = vadd.f32 %v1537_v21, %v1403_v52  ;;  %v1735_v59 = vmul.f32 %v2574_v42, %v2503_v9  ;;  %v1471_v21 = vld [vmem:[#allocation2 + $0x90] sm:$0xff] }
  0x9e   :  { %v2065_v56 = vadd.f32 %v2648_v14, %v1994_v48  ;;  %v554_v51 = vmul.f32 %v2540_v18, %v2499_v7  ;;  %v1932_v46 = vmul.f32 %v2576_v43, %v1863_v39  ;;  %v1341_v16 = vmul.f32 %v2552_v27, %v1862_v34 }
  0x9f   :  { %v1404_v53 = vadd.f32 %v1340_v47, %v1207_v23  ;;  %v1011_v1 = vadd.f32 %v947_v61, %v814_v29  ;;  %v1798_v4 = vadd.f32 %v1734_v50, %v1601_v44  ;;  %v1539_v0 = vmul.f32 %v2566_v38, %v2751_v45  ;;  %v1865_v50 = vld [vmem:[#allocation2 + $0x92] sm:$0xff] }
  0xa0   :  { %2129 = vst [vmem:[#allocation8 + $0x20] sm:$0xff] %v2065_v56  ;;  %v618_v54 = vadd.f32 %v554_v51, %v357_v32  ;;  %v751_v30 = vmul.f32 %v2542_v20, %v2700_v12  ;;  %v948_v7 = vmul.f32 %v2546_v24, %v2733_v26  ;;  %v1145_v31 = vmul.f32 %v2548_v25, %v2503_v9  ;;  %v3596_v12 = vld [vmem:[#allocation12_spill] sm:$0xff]  ;;  %v3597_v23 = vld [vmem:[#allocation13_spill] sm:$0xff] }
  0xa1   :  { %v1602_v41 = vadd.f32 %v1538_v6, %v1404_v53  ;;  %v1208_v60 = vadd.f32 %v1144_v37, %v1011_v1  ;;  %v1995_v55 = vadd.f32 %v1931_v3, %v1798_v4  ;;  %v358_v33 = vmul.f32 %v2535_v15, %v2712_v62 }
  0xa2   :  { %v815_v19 = vadd.f32 %v751_v30, %v618_v54  ;;  %v555_v17 = vmul.f32 %v2540_v18, %v2501_v8  ;;  %v1736_v5 = vmul.f32 %v2574_v42, %v3596_v12  ;;  %v1933_v57 = vmul.f32 %v2576_v43, %v2763_v22 }
  0xa3   :  { %v1799_v2 = vadd.f32 %v1735_v59, %v1602_v41  ;;  %v1405_v35 = vadd.f32 %v1341_v16, %v1208_v60  ;;  %v2066_v36 = vadd.f32 %v2648_v14, %v1995_v55  ;;  %v752_v13 = vmul.f32 %v2542_v20, %v1862_v34  ;;  %v2788_v34 = vld [vmem:[#allocation2 + $0x98] sm:$0xff]  ;;  %v3598_v41 = vld [vmem:[#allocation14_spill] sm:$0xff] }
  0xa4   :  { %v1012_v49 = vadd.f32 %v948_v7, %v815_v19  ;;  %v619_v40 = vadd.f32 %v555_v17, %v358_v33  ;;  %v1342_v62 = vmul.f32 %v2552_v27, %v1863_v39  ;;  %v1540_v8 = vmul.f32 %v2566_v38, %v1471_v21 }
  0xa5   :  { %v1996_v58 = vadd.f32 %v1932_v46, %v1799_v2  ;;  %v1603_v28 = vadd.f32 %v1539_v0, %v1405_v35  ;;  %2130 = vst [vmem:[#allocation8 + $0x28] sm:$0xff] %v2066_v36  ;;  %v949_v47 = vmul.f32 %v2546_v24, %v2751_v45  ;;  %v1146_v10 = vmul.f32 %v2548_v25, %v3596_v12  ;;  %v2802_v46 = vld [vmem:[#allocation2 + $0x9a] sm:$0xff]  ;;  %v1473_v2 = vld [vmem:[#allocation2 + $0xa8] sm:$0xff] }
  0xa6   :  { %v1209_v3 = vadd.f32 %v1145_v31, %v1012_v49  ;;  %v816_v63 = vadd.f32 %v752_v13, %v619_v40  ;;  %v359_v52 = vmul.f32 %v2535_v15, %v2733_v26  ;;  %v556_v6 = vmul.f32 %v2540_v18, %v2503_v9  ;;  %v2817_v35 = vld [vmem:[#allocation2 + $0xaa] sm:$0xff] }
  0xa7   :  { %v2067_v11 = vadd.f32 %v2648_v14, %v1996_v58  ;;  %v1800_v48 = vadd.f32 %v1736_v5, %v1603_v28  ;;  %v1737_v29 = vmul.f32 %v2574_v42, %v3597_v23  ;;  %v1934_v37 = vmul.f32 %v2576_v43, %v1865_v50  ;;  %v2827_v28 = vld [vmem:[#allocation2 + $0xb0] sm:$0xff] }
  0xa8   :  { %v1406_v61 = vadd.f32 %v1342_v62, %v1209_v3  ;;  %v1013_v32 = vadd.f32 %v949_v47, %v816_v63  ;;  %v1343_v44 = vmul.f32 %v2552_v27, %v2763_v22  ;;  %v620_v59 = vadd.f32 %v556_v6, %v359_v52  ;;  %v3599_v3 = vld [vmem:[#allocation15_spill] sm:$0xff]  ;;  %v490_v6 = vld [vmem:[#allocation2 + $0x99] sm:$0xff] }
  0xa9   :  { %2131 = vst [vmem:[#allocation8 + $0x30] sm:$0xff] %v2067_v11  ;;  %v1997_v56 = vadd.f32 %v1933_v57, %v1800_v48  ;;  %v753_v51 = vmul.f32 %v2542_v20, %v1863_v39  ;;  %v1541_v9 = vmul.f32 %v2566_v38, %v2788_v34  ;;  %v950_v1 = vmul.f32 %v2546_v24, %v1471_v21  ;;  %v2836_v11 = vld [vmem:[#allocation2 + $0xb2] sm:$0xff] }
  0xaa   :  { %v1604_v53 = vadd.f32 %v1540_v8, %v1406_v61  ;;  %v1210_v26 = vadd.f32 %v1146_v10, %v1013_v32  ;;  %v1147_v0 = vmul.f32 %v2548_v25, %v3597_v23  ;;  %v360_v54 = vmul.f32 %v2535_v15, %v2751_v45  ;;  %v1080_v32 = vld [vmem:[#allocation2 + $0xa9] sm:$0xff] }
  0xab   :  { %v2068_v16 = vadd.f32 %v2648_v14, %v1997_v56  ;;  %v817_v4 = vadd.f32 %v753_v51, %v620_v59  ;;  %v1738_v60 = vmul.f32 %v2574_v42, %v3598_v41  ;;  %v557_v7 = vmul.f32 %v2540_v18, %v3596_v12  ;;  %v2845_v51 = vld [vmem:[#allocation2 + $0xc0] sm:$0xff] }
  0xac   :  { %v1801_v30 = vadd.f32 %v1737_v29, %v1604_v53  ;;  %v1407_v39 = vadd.f32 %v1343_v44, %v1210_v26  ;;  %v1935_v31 = vmul.f32 %v2576_v43, %v2802_v46  ;;  %v1344_v19 = vmul.f32 %v2552_v27, %v1865_v50  ;;  %v3600_v26 = vld [vmem:[#allocation16_spill] sm:$0xff] }
  0xad   :  { %2132 = vst [vmem:[#allocation8 + $0x38] sm:$0xff] %v2068_v16  ;;  %v1014_v55 = vadd.f32 %v950_v1, %v817_v4  ;;  %v621_v45 = vadd.f32 %v557_v7, %v360_v54  ;;  %v754_v5 = vmul.f32 %v2542_v20, %v2763_v22  ;;  %v951_v12 = vmul.f32 %v2546_v24, %v2788_v34  ;;  %v2853_v16 = vld [vmem:[#allocation2 + $0xc1] sm:$0xff] }
  0xae   :  { %v1998_v33 = vadd.f32 %v1934_v37, %v1801_v30  ;;  %v1605_v17 = vadd.f32 %v1541_v9, %v1407_v39  ;;  %v1148_v36 = vmul.f32 %v2548_v25, %v3598_v41  ;;  %v361_v49 = vmul.f32 %v2535_v15, %v1471_v21 }
  0xaf   :  { %v1211_v57 = vadd.f32 %v1147_v0, %v1014_v55  ;;  %v818_v58 = vadd.f32 %v754_v5, %v621_v45  ;;  %v558_v62 = vmul.f32 %v2540_v18, %v3597_v23  ;;  %v1542_v22 = vmul.f32 %v2566_v38, %v1473_v2  ;;  %v1081_v55 = vld [vmem:[#allocation2 + $0xb1] sm:$0xff] }
  0xb0   :  { %v2069_v40 = vadd.f32 %v2648_v14, %v1998_v33  ;;  %v1802_v13 = vadd.f32 %v1738_v60, %v1605_v17  ;;  %v1739_v63 = vmul.f32 %v2574_v42, %v3599_v3  ;;  %v1936_v47 = vmul.f32 %v2576_v43, %v2817_v35  ;;  %v2861_v60 = vld [vmem:[#allocation2 + $0xc2] sm:$0xff] }
  0xb1   :  { %v1408_v8 = vadd.f32 %v1344_v19, %v1211_v57  ;;  %v1015_v10 = vadd.f32 %v951_v12, %v818_v58  ;;  %v622_v48 = vadd.f32 %v558_v62, %v361_v49  ;;  %v755_v52 = vmul.f32 %v2542_v20, %v1865_v50 }
  0xb2   :  { %2133 = vst [vmem:[#allocation8 + $0x40] sm:$0xff] %v2069_v40  ;;  %v1999_v21 = vadd.f32 %v1935_v31, %v1802_v13  ;;  %v1345_v23 = vmul.f32 %v2552_v27, %v2802_v46  ;;  %v1543_v29 = vmul.f32 %v2566_v38, %v2827_v28  ;;  %v952_v37 = vmul.f32 %v2546_v24, %v1473_v2 }
  0xb3   :  { %v1606_v61 = vadd.f32 %v1542_v22, %v1408_v8  ;;  %v1212_v44 = vadd.f32 %v1148_v36, %v1015_v10  ;;  %v819_v59 = vadd.f32 %v755_v52, %v622_v48  ;;  %v362_v50 = vmul.f32 %v2535_v15, %v2788_v34  ;;  %v2871_v36 = vld [vmem:[#allocation2 + $0xc8] sm:$0xff] }
  0xb4   :  { %v2070_v56 = vadd.f32 %v2648_v14, %v1999_v21  ;;  %v1740_v9 = vmul.f32 %v2574_v42, %v3600_v26  ;;  %v1937_v1 = vmul.f32 %v2576_v43, %v2836_v11  ;;  %v559_v4 = vmul.f32 %v2540_v18, %v490_v6  ;;  %v1673_v8 = vld [vmem:[#allocation2 + $0xc9] sm:$0xff] }
  0xb5   :  { %v1803_v53 = vadd.f32 %v1739_v63, %v1606_v61  ;;  %v1409_v0 = vadd.f32 %v1345_v23, %v1212_v44  ;;  %v1016_v54 = vadd.f32 %v952_v37, %v819_v59  ;;  %v1149_v30 = vmul.f32 %v2548_v25, %v1080_v32  ;;  %v1870_v52 = vld [vmem:[#allocation2 + $0xca] sm:$0xff]  ;;  %v2885_v61 = vld [vmem:[#allocation2 + $0xd8] sm:$0xff] }
  0xb6   :  { %2134 = vst [vmem:[#allocation8 + $0x48] sm:$0xff] %v2070_v56  ;;  %v1346_v39 = vmul.f32 %v2552_v27, %v2817_v35  ;;  %v1544_v41 = vmul.f32 %v2566_v38, %v2845_v51  ;;  %v623_v7 = vadd.f32 %v559_v4, %v362_v50  ;;  %v756_v31 = vmul.f32 %v2542_v20, %v2802_v46  ;;  %v1674_v50 = vld [vmem:[#allocation2 + $0xd9] sm:$0xff] }
  0xb7   :  { %v2000_v34 = vadd.f32 %v1936_v47, %v1803_v53  ;;  %v1607_v19 = vadd.f32 %v1543_v29, %v1409_v0  ;;  %v1213_v33 = vadd.f32 %v1149_v30, %v1016_v54  ;;  %v1741_v17 = vmul.f32 %v2574_v42, %v2853_v16  ;;  %v1871_v30 = vld [vmem:[#allocation2 + $0xda] sm:$0xff] }
  0xb8   :  { %v363_v45 = vmul.f32 %v2535_v15, %v1473_v2  ;;  %v820_v57 = vadd.f32 %v756_v31, %v623_v7  ;;  %v953_v12 = vmul.f32 %v2546_v24, %v2827_v28  ;;  %v560_v49 = vmul.f32 %v2540_v18, %v1080_v32  ;;  %v2905_v7 = vld [vmem:[#allocation2 + $0xe0] sm:$0xff] }
  0xb9   :  { %v2071_v5 = vadd.f32 %v2648_v14, %v2000_v34  ;;  %v1804_v40 = vadd.f32 %v1740_v9, %v1607_v19  ;;  %v1410_v46 = vadd.f32 %v1346_v39, %v1213_v33  ;;  %v1938_v13 = vmul.f32 %v2576_v43, %v2861_v60 }
  0xba   :  { %v1150_v58 = vmul.f32 %v2548_v25, %v1081_v55  ;;  %v1017_v62 = vadd.f32 %v953_v12, %v820_v57  ;;  %v1347_v2 = vmul.f32 %v2552_v27, %v2836_v11  ;;  %v624_v22 = vadd.f32 %v560_v49, %v363_v45  ;;  %v1675_v12 = vld [vmem:[#allocation2 + $0xe1] sm:$0xff] }
  0xbb   :  { %2135 = vst [vmem:[#allocation8 + $0x50] sm:$0xff] %v2071_v5  ;;  %v757_v3 = vmul.f32 %v2542_v20, %v2817_v35  ;;  %v2001_v63 = vadd.f32 %v1937_v1, %v1804_v40  ;;  %v1608_v47 = vadd.f32 %v1544_v41, %v1410_v46  ;;  %v1545_v21 = vmul.f32 %v2566_v38, %v2871_v36 }
  0xbc   :  { %v954_v10 = vmul.f32 %v2546_v24, %v2845_v51  ;;  %v1214_v48 = vadd.f32 %v1150_v58, %v1017_v62  ;;  %v364_v23 = vmul.f32 %v2535_v15, %v2827_v28  ;;  %v561_v29 = vmul.f32 %v2540_v18, %v1081_v55  ;;  %v2918_v58 = vld [vmem:[#allocation2 + $0xe2] sm:$0xff] }
  0xbd   :  { %v821_v6 = vadd.f32 %v757_v3, %v624_v22  ;;  %v2072_v35 = vadd.f32 %v2648_v14, %v2001_v63  ;;  %v1805_v37 = vadd.f32 %v1741_v17, %v1608_v47  ;;  %v1742_v32 = vmul.f32 %v2574_v42, %v1673_v8 }
  0xbe   :  { %v1151_v56 = vmul.f32 %v2548_v25, %v2853_v16  ;;  %v1411_v44 = vadd.f32 %v1347_v2, %v1214_v48  ;;  %v625_v53 = vadd.f32 %v561_v29, %v364_v23  ;;  %v758_v26 = vmul.f32 %v2542_v20, %v2836_v11 }
  0xbf   :  { %v1018_v59 = vadd.f32 %v954_v10, %v821_v6  ;;  %2136 = vst [vmem:[#allocation8 + $0x58] sm:$0xff] %v2072_v35  ;;  %v2002_v9 = vadd.f32 %v1938_v13, %v1805_v37  ;;  %v1939_v28 = vmul.f32 %v2576_v43, %v1870_v52  ;;  %v1348_v1 = vmul.f32 %v2552_v27, %v2861_v60  ;;  %v1479_v10 = vld [vmem:[#allocation2 + $0xf0] sm:$0xff] }
  0xc0   :  { %v1546_v4 = vmul.f32 %v2566_v38, %v2885_v61  ;;  %v1609_v0 = vadd.f32 %v1545_v21, %v1411_v44  ;;  %v822_v39 = vadd.f32 %v758_v26, %v625_v53  ;;  %v955_v34 = vmul.f32 %v2546_v24, %v2871_v36 }
  0xc1   :  { %v1215_v54 = vadd.f32 %v1151_v56, %v1018_v59  ;;  %v2073_v41 = vadd.f32 %v2648_v14, %v2002_v9  ;;  %v1743_v11 = vmul.f32 %v2574_v42, %v1674_v50  ;;  %v365_v31 = vmul.f32 %v2535_v15, %v2845_v51  ;;  %v1873_v59 = vld [vmem:[#allocation2 + $0xf2] sm:$0xff] }
  0xc2   :  { %v562_v55 = vmul.f32 %v2540_v18, %v2853_v16  ;;  %v1806_v19 = vadd.f32 %v1742_v32, %v1609_v0  ;;  %v1019_v17 = vadd.f32 %v955_v34, %v822_v39  ;;  %v1152_v45 = vmul.f32 %v2548_v25, %v1673_v8  ;;  %v1676_v32 = vld [vmem:[#allocation2 + $0xf1] sm:$0xff] }
  0xc3   :  { %v1412_v33 = vadd.f32 %v1348_v1, %v1215_v54  ;;  %2137 = vst [vmem:[#allocation8 + $0x60] sm:$0xff] %v2073_v41  ;;  %v1940_v5 = vmul.f32 %v2576_v43, %v1871_v30  ;;  %v1349_v57 = vmul.f32 %v2552_v27, %v1870_v52  ;;  %v759_v40 = vmul.f32 %v2542_v20, %v2861_v60 }
  0xc4   :  { %v626_v49 = vadd.f32 %v562_v55, %v365_v31  ;;  %v2003_v46 = vadd.f32 %v1939_v28, %v1806_v19  ;;  %v1216_v13 = vadd.f32 %v1152_v45, %v1019_v17  ;;  %v1547_v16 = vmul.f32 %v2566_v38, %v2905_v7  ;;  %v2936_v28 = vld [vmem:[#allocation2 + $0xf8] sm:$0xff] }
  0xc5   :  { %v1610_v51 = vadd.f32 %v1546_v4, %v1412_v33  ;;  %v956_v2 = vmul.f32 %v2546_v24, %v2885_v61  ;;  %v366_v22 = vmul.f32 %v2535_v15, %v2871_v36  ;;  %v563_v3 = vmul.f32 %v2540_v18, %v1673_v8  ;;  %v1677_v31 = vld [vmem:[#allocation2 + $0xf9] sm:$0xff] }
  0xc6   :  { %v823_v62 = vadd.f32 %v759_v40, %v626_v49  ;;  %v2074_v63 = vadd.f32 %v2648_v14, %v2003_v46  ;;  %v1413_v47 = vadd.f32 %v1349_v57, %v1216_v13  ;;  %v1744_v21 = vmul.f32 %v2574_v42, %v1675_v12  ;;  %v2949_v45 = vld [vmem:[#allocation2 + $0xfa] sm:$0xff]  ;;  %v1481_v13 = vld [vmem:[#allocation2 + $0x108] sm:$0xff] }
  0xc7   :  { %v1807_v60 = vadd.f32 %v1743_v11, %v1610_v51  ;;  %v1153_v6 = vmul.f32 %v2548_v25, %v1674_v50  ;;  %v627_v23 = vadd.f32 %v563_v3, %v366_v22  ;;  %v760_v29 = vmul.f32 %v2542_v20, %v1870_v52 }
  0xc8   :  { %v1020_v48 = vadd.f32 %v956_v2, %v823_v62  ;;  %2138 = vst [vmem:[#allocation8 + $0x68] sm:$0xff] %v2074_v63  ;;  %v1611_v37 = vadd.f32 %v1547_v16, %v1413_v47  ;;  %v1941_v36 = vmul.f32 %v2576_v43, %v2918_v58  ;;  %v1350_v8 = vmul.f32 %v2552_v27, %v1871_v30  ;;  %v1678_v47 = vld [vmem:[#allocation2 + $0x109] sm:$0xff] }
  0xc9   :  { %v2004_v35 = vadd.f32 %v1940_v5, %v1807_v60  ;;  %v1548_v44 = vmul.f32 %v2566_v38, %v1479_v10  ;;  %v824_v53 = vadd.f32 %v760_v29, %v627_v23  ;;  %v957_v26 = vmul.f32 %v2546_v24, %v2905_v7 }
  0xca   :  { %v1217_v56 = vadd.f32 %v1153_v6, %v1020_v48  ;;  %v1808_v52 = vadd.f32 %v1744_v21, %v1611_v37  ;;  %v367_v1 = vmul.f32 %v2535_v15, %v2885_v61  ;;  %v564_v4 = vmul.f32 %v2540_v18, %v1674_v50 }
  0xcb   :  { %v2075_v9 = vadd.f32 %v2648_v14, %v2004_v35  ;;  %v1745_v54 = vmul.f32 %v2574_v42, %v1676_v32  ;;  %v1021_v39 = vadd.f32 %v957_v26, %v824_v53  ;;  %v1154_v34 = vmul.f32 %v2548_v25, %v1675_v12 }
  0xcc   :  { %v1414_v0 = vadd.f32 %v1350_v8, %v1217_v56  ;;  %v2005_v41 = vadd.f32 %v1941_v36, %v1808_v52  ;;  %v1942_v11 = vmul.f32 %v2576_v43, %v1873_v59  ;;  %v628_v55 = vadd.f32 %v564_v4, %v367_v1  ;;  %v2970_v8 = vld [vmem:[#allocation2 + $0x110] sm:$0xff] }
  0xcd   :  { %2139 = vst [vmem:[#allocation8 + $0x70] sm:$0xff] %v2075_v9  ;;  %v761_v19 = vmul.f32 %v2542_v20, %v1871_v30  ;;  %v1218_v17 = vadd.f32 %v1154_v34, %v1021_v39  ;;  %v1351_v61 = vmul.f32 %v2552_v27, %v2918_v58  ;;  %v1549_v50 = vmul.f32 %v2566_v38, %v2936_v28  ;;  %v2977_v1 = vld [vmem:[#allocation2 + $0x112] sm:$0xff] }
  0xce   :  { %v1612_v33 = vadd.f32 %v1548_v44, %v1414_v0  ;;  %v2076_v5 = vadd.f32 %v2648_v14, %v2005_v41  ;;  %v958_v49 = vmul.f32 %v2546_v24, %v1479_v10  ;;  %v368_v40 = vmul.f32 %v2535_v15, %v2905_v7  ;;  %v2961_v7 = vld [vmem:[#allocation2 + $0x10a] sm:$0xff] }
  0xcf   :  { %v825_v57 = vadd.f32 %v761_v19, %v628_v55  ;;  %v1415_v30 = vadd.f32 %v1351_v61, %v1218_v17  ;;  %v1746_v51 = vmul.f32 %v2574_v42, %v1677_v31  ;;  %v565_v16 = vmul.f32 %v2540_v18, %v1675_v12  ;;  %v2986_v19 = vld [vmem:[#allocation2 + $0x120] sm:$0xff] }
  0xd0   :  { %v1809_v46 = vadd.f32 %v1745_v54, %v1612_v33  ;;  %2140 = vst [vmem:[#allocation8 + $0x78] sm:$0xff] %v2076_v5  ;;  %v1943_v62 = vmul.f32 %v2576_v43, %v2949_v45  ;;  %v1155_v22 = vmul.f32 %v2548_v25, %v1676_v32  ;;  %v1352_v3 = vmul.f32 %v2552_v27, %v1873_v59 }
  0xd1   :  { %v1022_v2 = vadd.f32 %v958_v49, %v825_v57  ;;  %v1613_v60 = vadd.f32 %v1549_v50, %v1415_v30  ;;  %v629_v21 = vadd.f32 %v565_v16, %v368_v40  ;;  %v762_v48 = vmul.f32 %v2542_v20, %v2918_v58  ;;  %v2993_v50 = vld [vmem:[#allocation2 + $0x121] sm:$0xff] }
  0xd2   :  { %v2006_v63 = vadd.f32 %v1942_v11, %v1809_v46  ;;  %v1550_v12 = vmul.f32 %v2566_v38, %v1481_v13  ;;  %v959_v23 = vmul.f32 %v2546_v24, %v2936_v28  ;;  %v369_v29 = vmul.f32 %v2535_v15, %v1479_v10  ;;  %v1679_v10 = vld [vmem:[#allocation2 + $0x111] sm:$0xff] }
  0xd3   :  { %v1219_v6 = vadd.f32 %v1155_v22, %v1022_v2  ;;  %v1810_v37 = vadd.f32 %v1746_v51, %v1613_v60  ;;  %v826_v36 = vadd.f32 %v762_v48, %v629_v21  ;;  %v566_v56 = vmul.f32 %v2540_v18, %v1676_v32  ;;  %v3001_v51 = vld [vmem:[#allocation2 + $0x122] sm:$0xff] }
  0xd4   :  { %v2077_v35 = vadd.f32 %v2648_v14, %v2006_v63  ;;  %v1747_v53 = vmul.f32 %v2574_v42, %v1678_v47  ;;  %v1944_v58 = vmul.f32 %v2576_v43, %v2961_v7  ;;  %v1156_v26 = vmul.f32 %v2548_v25, %v1677_v31  ;;  %v3011_v48 = vld [vmem:[#allocation2 + $0x128] sm:$0xff] }
  0xd5   :  { %v1416_v44 = vadd.f32 %v1352_v3, %v1219_v6  ;;  %v2007_v9 = vadd.f32 %v1943_v62, %v1810_v37  ;;  %v1023_v52 = vadd.f32 %v959_v23, %v826_v36  ;;  %v630_v4 = vadd.f32 %v566_v56, %v369_v29  ;;  %v3027_v37 = vld [vmem:[#allocation3 + $0x3] ss:$0 sm:$0xff] }
  0xd6   :  { %2141 = vst [vmem:[#allocation8 + $0x80] sm:$0xff] %v2077_v35  ;;  %v763_v0 = vmul.f32 %v2542_v20, %v1873_v59  ;;  %v1353_v32 = vmul.f32 %v2552_v27, %v2949_v45  ;;  %v1551_v39 = vmul.f32 %v2566_v38, %v2970_v8  ;;  %v960_v34 = vmul.f32 %v2546_v24, %v1481_v13 }
  0xd7   :  { %v1614_v54 = vadd.f32 %v1550_v12, %v1416_v44  ;;  %v2078_v41 = vadd.f32 %v2648_v14, %v2007_v9  ;;  %v1220_v11 = vadd.f32 %v1156_v26, %v1023_v52  ;;  %v370_v33 = vmul.f32 %v2535_v15, %v2936_v28  ;;  %v3033_v44 = vld [vmem:[#allocation2 + $0x138] sm:$0xff]  ;;  %v3043_v52 = vld [vmem:[#allocation3 + $0x7] ss:$0 sm:$0xff] }
  0xd8   :  { %v827_v55 = vadd.f32 %v763_v0, %v630_v4  ;;  %v1748_v59 = vmul.f32 %v2574_v42, %v1679_v10  ;;  %v1945_v61 = vmul.f32 %v2576_v43, %v2977_v1  ;;  %v567_v5 = vmul.f32 %v2540_v18, %v1677_v31  ;;  %v3047_v0 = vld [vmem:[#allocation3 + $0x4] ss:$0 sm:$0xff] }
  0xd9   :  { %v1811_v17 = vadd.f32 %v1747_v53, %v1614_v54  ;;  %2142 = vst [vmem:[#allocation8 + $0x88] sm:$0xff] %v2078_v41  ;;  %v1417_v57 = vadd.f32 %v1353_v32, %v1220_v11  ;;  %v1157_v40 = vmul.f32 %v2548_v25, %v1678_v47  ;;  %v1354_v46 = vmul.f32 %v2552_v27, %v2961_v7  ;;  %v3035_v53 = vld [vmem:[#allocation3] ss:$0 sm:$0xff]  ;;  %v3055_v11 = vld [vmem:[#allocation3 + $0x8] ss:$0 sm:$0xff] }
  0xda   :  { %v1024_v49 = vadd.f32 %v960_v34, %v827_v55  ;;  %v1552_v28 = vmul.f32 %v2566_v38, %v2986_v19  ;;  %v631_v16 = vadd.f32 %v567_v5, %v370_v33  ;;  %v764_v62 = vmul.f32 %v2542_v20, %v2949_v45  ;;  %v3059_v33 = vld [vmem:[#allocation3 + $0x5] ss:$0 sm:$0xff] }
  0xdb   :  { %v2008_v30 = vadd.f32 %v1944_v58, %v1811_v17  ;;  %v1615_v2 = vadd.f32 %v1551_v39, %v1417_v57  ;;  %v1749_v22 = vmul.f32 %v2574_v42, %v2993_v50  ;;  %v371_v3 = vmul.f32 %v2535_v15, %v1481_v13  ;;  %v3019_v13 = vld [vmem:[#allocation2 + $0x129] sm:$0xff]  ;;  %v3039_v58 = vld [vmem:[#allocation3 + $0x1] ss:$0 sm:$0xff] }
  0xdc   :  { %v1221_v31 = vadd.f32 %v1157_v40, %v1024_v49  ;;  %v828_v60 = vadd.f32 %v764_v62, %v631_v16  ;;  %v961_v21 = vmul.f32 %v2546_v24, %v2970_v8  ;;  %v568_v6 = vmul.f32 %v2540_v18, %v1678_v47  ;;  %v3021_v24 = vld [vmem:[#allocation3 + $0x2] ss:$0 sm:$0xff] }
  0xdd   :  { %v2079_v63 = vadd.f32 %v2648_v14, %v2008_v30  ;;  %v1812_v12 = vadd.f32 %v1748_v59, %v1615_v2  ;;  %v1946_v20 = vmul.f32 %v2576_v43, %v3001_v51  ;;  %v1158_v45 = vmul.f32 %v2548_v25, %v1679_v10  ;;  %v3063_v59 = vld [vmem:[#allocation3 + $0x6] ss:$0 sm:$0xff] }
  0xde   :  { %v1418_v23 = vadd.f32 %v1354_v46, %v1221_v31  ;;  %v1025_v42 = vadd.f32 %v961_v21, %v828_v60  ;;  %v1355_v15 = vmul.f32 %v2552_v27, %v2977_v1  ;;  %v632_v29 = vadd.f32 %v568_v6, %v371_v3  ;;  %v3031_v27 = vld [vmem:[#allocation2 + $0x12a] sm:$0xff]  ;;  %v1683_v21 = vld [vmem:[#allocation2 + $0x141] sm:$0xff] }
  0xdf   :  { %2143 = vst [vmem:[#allocation8 + $0x90] sm:$0xff] %v2079_v63  ;;  %v765_v18 = vmul.f32 %v3021_v24, %v2961_v7  ;;  %v2009_v47 = vadd.f32 %v1945_v61, %v1812_v12  ;;  %v1553_v43 = vmul.f32 %v2566_v38, %v3011_v48  ;;  %v962_v25 = vmul.f32 %v3027_v37, %v2986_v19 }
  0xe0   :  { %v1616_v35 = vadd.f32 %v1552_v28, %v1418_v23  ;;  %v1222_v36 = vadd.f32 %v1158_v45, %v1025_v42  ;;  %v372_v7 = vmul.f32 %v3035_v53, %v2970_v8  ;;  %v569_v38 = vmul.f32 %v3039_v58, %v1679_v10  ;;  %v3051_v8 = vld [vmem:[#allocation2 + $0x139] sm:$0xff]  ;;  %v3087_v45 = vld [vmem:[#allocation2 + $0x142] sm:$0xff] }
  0xe1   :  { %v829_v56 = vadd.f32 %v765_v18, %v632_v29  ;;  %v2080_v26 = vadd.f32 %v2648_v14, %v2009_v47  ;;  %v1750_v4 = vmul.f32 %v3043_v52, %v3019_v13  ;;  %v1159_v54 = vmul.f32 %v3047_v0, %v2993_v50  ;;  %v3072_v28 = vld [vmem:[#allocation2 + $0x140] sm:$0xff] }
  0xe2   :  { %v1813_v9 = vadd.f32 %v1749_v22, %v1616_v35  ;;  %v1419_v32 = vadd.f32 %v1355_v15, %v1222_v36  ;;  %v633_v34 = vadd.f32 %v569_v38, %v372_v7  ;;  %v766_v10 = vmul.f32 %v3021_v24, %v2977_v1  ;;  %v1879_v1 = vld [vmem:[#allocation2 + $0x13a] sm:$0xff] }
  0xe3   :  { %v1026_v39 = vadd.f32 %v962_v25, %v829_v56  ;;  %2144 = vst [vmem:[#allocation8 + $0x98] sm:$0xff] %v2080_v26  ;;  %v1947_v55 = vmul.f32 %v3055_v11, %v3031_v27  ;;  %v1356_v17 = vmul.f32 %v3059_v33, %v3001_v51  ;;  %v1554_v61 = vmul.f32 %v3063_v59, %v3033_v44  ;;  %v1487_v25 = vld [vmem:[#allocation2 + $0x150] sm:$0xff] }
  0xe4   :  { %v2010_v41 = vadd.f32 %v1946_v20, %v1813_v9  ;;  %v1617_v5 = vadd.f32 %v1553_v43, %v1419_v32  ;;  %v830_v49 = vadd.f32 %v766_v10, %v633_v34  ;;  %v963_v40 = vmul.f32 %v3027_v37, %v3011_v48 }
  0xe5   :  { %v1223_v57 = vadd.f32 %v1159_v54, %v1026_v39  ;;  %v1751_v30 = vmul.f32 %v3043_v52, %v3051_v8  ;;  %v373_v16 = vmul.f32 %v3035_v53, %v2986_v19  ;;  %v570_v62 = vmul.f32 %v3039_v58, %v2993_v50  ;;  %v3105_v39 = vld [vmem:[#allocation2 + $0x152] sm:$0xff] }
  0xe6   :  { %v2081_v46 = vadd.f32 %v2648_v14, %v2010_v41  ;;  %v1814_v2 = vadd.f32 %v1750_v4, %v1617_v5  ;;  %v1027_v22 = vadd.f32 %v963_v40, %v830_v49  ;;  %v1160_v3 = vmul.f32 %v3047_v0, %v3019_v13  ;;  %v1684_v4 = vld [vmem:[#allocation2 + $0x151] sm:$0xff] }
  0xe7   :  { %v1420_v31 = vadd.f32 %v1356_v17, %v1223_v57  ;;  %v1948_v63 = vmul.f32 %v3055_v11, %v1879_v1  ;;  %v1357_v60 = vmul.f32 %v3059_v33, %v3031_v27  ;;  %v634_v6 = vadd.f32 %v570_v62, %v373_v16 }
  0xe8   :  { %2145 = vst [vmem:[#allocation8 + $0xa0] sm:$0xff] %v2081_v46  ;;  %v767_v19 = vmul.f32 %v3021_v24, %v3001_v51  ;;  %v2011_v12 = vadd.f32 %v1947_v55, %v1814_v2  ;;  %v1224_v50 = vadd.f32 %v1160_v3, %v1027_v22  ;;  %v1555_v20 = vmul.f32 %v3063_v59, %v3072_v28  ;;  %v3110_v55 = vld [vmem:[#allocation2 + $0x158] sm:$0xff]  ;;  %v3130_v3 = vld [vmem:[%s3580_s1] ss:$0 sm:$0xff] }
  0xe9   :  { %v1618_v23 = vadd.f32 %v1554_v61, %v1420_v31  ;;  %v964_v15 = vmul.f32 %v3027_v37, %v3033_v44  ;;  %v374_v29 = vmul.f32 %v3035_v53, %v3011_v48  ;;  %v571_v18 = vmul.f32 %v3039_v58, %v3019_v13  ;;  %v3125_v22 = vld [vmem:[#allocation2 + $0x15a] sm:$0xff] }
  0xea   :  { %v831_v42 = vadd.f32 %v767_v19, %v634_v6  ;;  %v2082_v51 = vadd.f32 %v2648_v14, %v2011_v12  ;;  %v1421_v35 = vadd.f32 %v1357_v60, %v1224_v50  ;;  %v1752_v43 = vmul.f32 %v3043_v52, %v1683_v21  ;;  %v1489_v50 = vld [vmem:[#allocation2 + $0x168] sm:$0xff] }
  0xeb   :  { %v1815_v47 = vadd.f32 %v1751_v30, %v1618_v23  ;;  %v1161_v56 = vmul.f32 %v3047_v0, %v3051_v8  ;;  %v635_v7 = vadd.f32 %v571_v18, %v374_v29  ;;  %v768_v38 = vmul.f32 %v3021_v24, %v3031_v27  ;;  %v1685_v30 = vld [vmem:[#allocation2 + $0x159] sm:$0xff] }
  0xec   :  { %v1028_v36 = vadd.f32 %v964_v15, %v831_v42  ;;  %2146 = vst [vmem:[#allocation8 + $0xa8] sm:$0xff] %v2082_v51  ;;  %v1619_v26 = vadd.f32 %v1555_v20, %v1421_v35  ;;  %v1949_v13 = vmul.f32 %v3055_v11, %v3087_v45  ;;  %v1358_v9 = vmul.f32 %v3059_v33, %v1879_v1  ;;  %v3143_v35 = vld [vmem:[#allocation2 + $0x16a] sm:$0xff] }
  0xed   :  { %v2012_v48 = vadd.f32 %v1948_v63, %v1815_v47  ;;  %v1556_v32 = vmul.f32 %v3063_v59, %v1487_v25  ;;  %v832_v34 = vadd.f32 %v768_v38, %v635_v7  ;;  %v965_v10 = vmul.f32 %v3027_v37, %v3072_v28 }
  0xee   :  { %v1225_v54 = vadd.f32 %v1161_v56, %v1028_v36  ;;  %v1816_v41 = vadd.f32 %v1752_v43, %v1619_v26  ;;  %v375_v17 = vmul.f32 %v3035_v53, %v3033_v44  ;;  %v572_v61 = vmul.f32 %v3039_v58, %v3051_v8 }
  0xef   :  { %v2083_v27 = vadd.f32 %v2648_v14, %v2012_v48  ;;  %v1753_v57 = vmul.f32 %v3043_v52, %v1684_v4  ;;  %v1029_v49 = vadd.f32 %v965_v10, %v832_v34  ;;  %v1162_v40 = vmul.f32 %v3047_v0, %v1683_v21 }
  0xf0   :  { %v1422_v5 = vadd.f32 %v1358_v9, %v1225_v54  ;;  %v2013_v46 = vadd.f32 %v1949_v13, %v1816_v41  ;;  %v1950_v14 = vmul.f32 %v3055_v11, %v3105_v39  ;;  %v636_v16 = vadd.f32 %v572_v61, %v375_v17  ;;  %v1490_v9 = vld [vmem:[#allocation2 + $0x170] sm:$0xff] }
  0xf1   :  { %2147 = vst [vmem:[#allocation8 + $0xb0] sm:$0xff] %v2083_v27  ;;  %v769_v62 = vmul.f32 %v3021_v24, %v1879_v1  ;;  %v1226_v44 = vadd.f32 %v1162_v40, %v1029_v49  ;;  %v1359_v8 = vmul.f32 %v3059_v33, %v3087_v45  ;;  %v1557_v31 = vmul.f32 %v3063_v59, %v3110_v55  ;;  %v1687_v17 = vld [vmem:[#allocation2 + $0x171] sm:$0xff] }
  0xf2   :  { %v1620_v2 = vadd.f32 %v1556_v32, %v1422_v5  ;;  %v2084_v63 = vadd.f32 %v3130_v3, %v2013_v46  ;;  %v966_v1 = vmul.f32 %v3027_v37, %v1487_v25  ;;  %v376_v6 = vmul.f32 %v3035_v53, %v3072_v28  ;;  %v1686_v28 = vld [vmem:[#allocation2 + $0x169] sm:$0xff] }
  0xf3   :  { %v833_v60 = vadd.f32 %v769_v62, %v636_v16  ;;  %v1423_v12 = vadd.f32 %v1359_v8, %v1226_v44  ;;  %v1754_v23 = vmul.f32 %v3043_v52, %v1685_v30  ;;  %v573_v20 = vmul.f32 %v3039_v58, %v1683_v21  ;;  %v1491_v62 = vld [vmem:[#allocation2 + $0x180] sm:$0xff] }
  0xf4   :  { %v1817_v19 = vadd.f32 %v1753_v57, %v1620_v2  ;;  %2148 = vst [vmem:[#allocation8 + $0xb8] sm:$0xff] %v2084_v63  ;;  %v1951_v42 = vmul.f32 %v3055_v11, %v3125_v22  ;;  %v1163_v29 = vmul.f32 %v3047_v0, %v1684_v4  ;;  %v1360_v18 = vmul.f32 %v3059_v33, %v3105_v39 }
  0xf5   :  { %v1030_v15 = vadd.f32 %v966_v1, %v833_v60  ;;  %v1621_v47 = vadd.f32 %v1557_v31, %v1423_v12  ;;  %v637_v43 = vadd.f32 %v573_v20, %v376_v6  ;;  %v770_v36 = vmul.f32 %v3021_v24, %v3087_v45  ;;  %v1688_v31 = vld [vmem:[#allocation2 + $0x181] sm:$0xff] }
  0xf6   :  { %v2014_v51 = vadd.f32 %v1950_v14, %v1817_v19  ;;  %v1558_v56 = vmul.f32 %v3063_v59, %v1489_v50  ;;  %v967_v7 = vmul.f32 %v3027_v37, %v3110_v55  ;;  %v377_v38 = vmul.f32 %v3035_v53, %v1487_v25  ;;  %v1884_v25 = vld [vmem:[#allocation2 + $0x172] sm:$0xff] }
  0xf7   :  { %v1227_v21 = vadd.f32 %v1163_v29, %v1030_v15  ;;  %v1818_v26 = vadd.f32 %v1754_v23, %v1621_v47  ;;  %v834_v13 = vadd.f32 %v770_v36, %v637_v43  ;;  %v574_v54 = vmul.f32 %v3039_v58, %v1684_v4  ;;  %v1492_v36 = vld [vmem:[#allocation2 + $0x188] sm:$0xff] }
  0xf8   :  { %v2085_v48 = vadd.f32 %v3130_v3, %v2014_v51  ;;  %v1755_v34 = vmul.f32 %v3043_v52, %v1686_v28  ;;  %v1952_v45 = vmul.f32 %v3055_v11, %v3143_v35  ;;  %v1164_v10 = vmul.f32 %v3047_v0, %v1685_v30 }
  0xf9   :  { %v1424_v32 = vadd.f32 %v1360_v18, %v1227_v21  ;;  %v2015_v27 = vadd.f32 %v1951_v42, %v1818_v26  ;;  %v1031_v41 = vadd.f32 %v967_v7, %v834_v13  ;;  %v638_v61 = vadd.f32 %v574_v54, %v377_v38 }
  0xfa   :  { %2149 = vst [vmem:[#allocation8 + $0xc0] sm:$0xff] %v2085_v48  ;;  %v771_v5 = vmul.f32 %v3021_v24, %v3105_v39  ;;  %v1361_v4 = vmul.f32 %v3059_v33, %v3125_v22  ;;  %v1559_v49 = vmul.f32 %v3063_v59, %v1490_v9  ;;  %v968_v40 = vmul.f32 %v3027_v37, %v1489_v50 }
  0xfb   :  { %v1622_v57 = vadd.f32 %v1558_v56, %v1424_v32  ;;  %v2086_v46 = vadd.f32 %v3130_v3, %v2015_v27  ;;  %v1228_v14 = vadd.f32 %v1164_v10, %v1031_v41  ;;  %v378_v2 = vmul.f32 %v3035_v53, %v3110_v55  ;;  %v1885_v55 = vld [vmem:[#allocation2 + $0x182] sm:$0xff] }
  0xfc   :  { %v835_v16 = vadd.f32 %v771_v5, %v638_v61  ;;  %v1756_v8 = vmul.f32 %v3043_v52, %v1687_v17  ;;  %v1953_v39 = vmul.f32 %v3055_v11, %v1884_v25  ;;  %v575_v63 = vmul.f32 %v3039_v58, %v1685_v30  ;;  %v1689_v10 = vld [vmem:[#allocation2 + $0x189] sm:$0xff] }
  0xfd   :  { %v1819_v44 = vadd.f32 %v1755_v34, %v1622_v57  ;;  %2150 = vst [vmem:[#allocation8 + $0xc8] sm:$0xff] %v2086_v46  ;;  %v1425_v60 = vadd.f32 %v1361_v4, %v1228_v14  ;;  %v1165_v6 = vmul.f32 %v3047_v0, %v1686_v28  ;;  %v1362_v19 = vmul.f32 %v3059_v33, %v3143_v35  ;;  %v1886_v46 = vld [vmem:[#allocation2 + $0x18a] sm:$0xff] }
  0xfe   :  { %v1032_v1 = vadd.f32 %v968_v40, %v835_v16  ;;  %v1560_v23 = vmul.f32 %v3063_v59, %v1491_v62  ;;  %v639_v20 = vadd.f32 %v575_v63, %v378_v2  ;;  %v772_v42 = vmul.f32 %v3021_v24, %v3125_v22  ;;  %v1690_v16 = vld [vmem:[#allocation2 + $0x199] sm:$0xff] }
  0xff   :  { %v2016_v12 = vadd.f32 %v1952_v45, %v1819_v44  ;;  %v1623_v15 = vadd.f32 %v1559_v49, %v1425_v60  ;;  %v1757_v30 = vmul.f32 %v3043_v52, %v1688_v31  ;;  %v379_v18 = vmul.f32 %v3035_v53, %v1489_v50  ;;  %v314_v49 = vld [vmem:[#allocation2 + $0x1c8] sm:$0xff]  ;;  %v1887_v60 = vld [vmem:[#allocation2 + $0x19a] sm:$0xff] }
 0x100   :  { %v1229_v29 = vadd.f32 %v1165_v6, %v1032_v1  ;;  %v836_v47 = vadd.f32 %v772_v42, %v639_v20  ;;  %v969_v43 = vmul.f32 %v3027_v37, %v1490_v9  ;;  %v576_v21 = vmul.f32 %v3039_v58, %v1686_v28  ;;  %v511_v44 = vld [vmem:[#allocation2 + $0x1c9] sm:$0xff] }
 0x101   :  { %v2087_v51 = vadd.f32 %v3130_v3, %v2016_v12  ;;  %v1820_v56 = vadd.f32 %v1756_v8, %v1623_v15  ;;  %v1954_v38 = vmul.f32 %v3055_v11, %v1885_v55  ;;  %v1166_v22 = vmul.f32 %v3047_v0, %v1687_v17 }
 0x102   :  { %v1426_v7 = vadd.f32 %v1362_v19, %v1229_v29  ;;  %v1033_v48 = vadd.f32 %v969_v43, %v836_v47  ;;  %v640_v26 = vadd.f32 %v576_v21, %v379_v18  ;;  %v773_v50 = vmul.f32 %v3021_v24, %v3143_v35  ;;  %v708_v19 = vld [vmem:[#allocation2 + $0x1ca] sm:$0xff]  ;;  %v905_v18 = vld [vmem:[#allocation2 + $0x1e0] sm:$0xff] }
 0x103   :  { %2151 = vst [vmem:[#allocation8 + $0xd0] sm:$0xff] %v2087_v51  ;;  %v970_v13 = vmul.f32 %v3027_v37, %v1491_v62  ;;  %v2017_v54 = vadd.f32 %v1953_v39, %v1820_v56  ;;  %v1363_v34 = vmul.f32 %v3059_v33, %v1884_v25  ;;  %v1561_v28 = vmul.f32 %v3063_v59, %v1492_v36  ;;  %v2233_v39 = vld [vmem:[#allocation2] sm:$0xff]  ;;  %v315_v51 = vld [vmem:[#allocation2 + $0x1d0] sm:$0xff] }
 0x104   :  { %v1624_v32 = vadd.f32 %v1560_v23, %v1426_v7  ;;  %v1230_v45 = vadd.f32 %v1166_v22, %v1033_v48  ;;  %v837_v27 = vadd.f32 %v773_v50, %v640_v26  ;;  %v380_v41 = vmul.f32 %v3035_v53, %v1490_v9  ;;  %v512_v47 = vld [vmem:[#allocation2 + $0x1d1] sm:$0xff]  ;;  %v1102_v26 = vld [vmem:[#allocation2 + $0x1e1] sm:$0xff] }
 0x105   :  { %v577_v61 = vmul.f32 %v3039_v58, %v1687_v17  ;;  %v2088_v5 = vadd.f32 %v3130_v3, %v2017_v54  ;;  %v1167_v35 = vmul.f32 %v3047_v0, %v1688_v31  ;;  %v774_v4 = vmul.f32 %v3021_v24, %v1884_v25  ;;  %v709_v50 = vld [vmem:[#allocation2 + $0x1d2] sm:$0xff] }
 0x106   :  { %v1821_v57 = vadd.f32 %v1757_v30, %v1624_v32  ;;  %v1427_v40 = vadd.f32 %v1363_v34, %v1230_v45  ;;  %v1034_v14 = vadd.f32 %v970_v13, %v837_v27  ;;  %v971_v2 = vmul.f32 %v3027_v37, %v1492_v36  ;;  %v1691_v36 = vld [vmem:[#allocation2 + $0x1a1] sm:$0xff] }
 0x107   :  { %v641_v62 = vadd.f32 %v577_v61, %v380_v41  ;;  %2152 = vst [vmem:[#allocation8 + $0xd8] sm:$0xff] %v2088_v5  ;;  %v1758_v17 = vmul.f32 %v3043_v52, %v1689_v10  ;;  %v1364_v8 = vmul.f32 %v3059_v33, %v1885_v55  ;;  %v1562_v31 = vmul.f32 %v2233_v39, %v3063_v59  ;;  %v1888_v13 = vld [vmem:[#allocation2 + $0x1a2] sm:$0xff] }
 0x108   :  { %v2018_v9 = vadd.f32 %v1954_v38, %v1821_v57  ;;  %v1625_v63 = vadd.f32 %v1561_v28, %v1427_v40  ;;  %v1231_v25 = vadd.f32 %v1167_v35, %v1034_v14  ;;  %v383_v6 = vmul.f32 %v3035_v53, %v314_v49  ;;  %v1299_v34 = vld [vmem:[#allocation2 + $0x1e2] sm:$0xff] }
 0x109   :  { %v838_v1 = vadd.f32 %v774_v4, %v641_v62  ;;  %v1955_v23 = vmul.f32 %v3055_v11, %v1886_v46  ;;  %v1759_v20 = vmul.f32 %v3043_v52, %v1690_v16  ;;  %v580_v42 = vmul.f32 %v3039_v58, %v511_v44  ;;  %v906_v5 = vld [vmem:[#allocation2 + $0x1e8] sm:$0xff]  ;;  %v1497_v4 = vld [vmem:[#allocation2 + $0x1f8] sm:$0xff] }
 0x10a   :  { %v2089_v12 = vadd.f32 %v3130_v3, %v2018_v9  ;;  %v1822_v15 = vadd.f32 %v1758_v17, %v1625_v63  ;;  %v1428_v55 = vadd.f32 %v1364_v8, %v1231_v25  ;;  %v1168_v30 = vmul.f32 %v3047_v0, %v1689_v10  ;;  %v1103_v44 = vld [vmem:[#allocation2 + $0x1e9] sm:$0xff]  ;;  %v3214_v17 = vld [vmem:[#allocation2 + $0x1fa] sm:$0xff] }
 0x10b   :  { %v1035_v29 = vadd.f32 %v971_v2, %v838_v1  ;;  %v1956_v43 = vmul.f32 %v3055_v11, %v1887_v60  ;;  %v644_v21 = vadd.f32 %v580_v42, %v383_v6  ;;  %v777_v56 = vmul.f32 %v3021_v24, %v708_v19  ;;  %v1694_v2 = vld [vmem:[#allocation2 + $0x1f9] sm:$0xff] }
 0x10c   :  { %2153 = vst [vmem:[#allocation8 + $0xe0] sm:$0xff] %v2089_v12  ;;  %v2019_v7 = vadd.f32 %v1955_v23, %v1822_v15  ;;  %v1626_v38 = vadd.f32 %v1562_v31, %v1428_v55  ;;  %v1365_v48 = vmul.f32 %v3059_v33, %v1886_v46  ;;  %v974_v32 = vmul.f32 %v3027_v37, %v905_v18  ;;  %v1498_v55 = vld [vmem:[#allocation2 + $0x200] sm:$0xff] }
 0x10d   :  { %v1232_v22 = vadd.f32 %v1168_v30, %v1035_v29  ;;  %v841_v54 = vadd.f32 %v777_v56, %v644_v21  ;;  %v384_v28 = vmul.f32 %v3035_v53, %v315_v51  ;;  %v581_v45 = vmul.f32 %v3039_v58, %v512_v47  ;;  %v1695_v29 = vld [vmem:[#allocation2 + $0x201] sm:$0xff] }
 0x10e   :  { %v2090_v10 = vadd.f32 %v3130_v3, %v2019_v7  ;;  %v1823_v27 = vadd.f32 %v1759_v20, %v1626_v38  ;;  %v1760_v61 = vmul.f32 %v3043_v52, %v1691_v36  ;;  %v1171_v35 = vmul.f32 %v3047_v0, %v1102_v26  ;;  %v1892_v56 = vld [vmem:[#allocation2 + $0x202] sm:$0xff] }
 0x10f   :  { %v1429_v41 = vadd.f32 %v1365_v48, %v1232_v22  ;;  %v1038_v57 = vadd.f32 %v974_v32, %v841_v54  ;;  %v645_v49 = vadd.f32 %v581_v45, %v384_v28  ;;  %v778_v40 = vmul.f32 %v3021_v24, %v709_v50 }
 0x110   :  { %2154 = vst [vmem:[#allocation8 + $0xe8] sm:$0xff] %v2090_v10  ;;  %v2020_v46 = vadd.f32 %v1956_v43, %v1823_v27  ;;  %v1957_v16 = vmul.f32 %v3055_v11, %v1888_v13  ;;  %v1368_v62 = vmul.f32 %v3059_v33, %v1299_v34  ;;  %v975_v39 = vmul.f32 %v3027_v37, %v906_v5 }
 0x111   :  { %v1627_v14 = vadd.f32 %v1562_v31, %v1429_v41  ;;  %v1235_v9 = vadd.f32 %v1171_v35, %v1038_v57  ;;  %v842_v8 = vadd.f32 %v778_v40, %v645_v49  ;;  %v385_v63 = vmul.f32 %v3035_v53, %v905_v18  ;;  %v1300_v31 = vld [vmem:[#allocation2 + $0x1ea] sm:$0xff]  ;;  %v1893_v35 = vld [vmem:[#allocation2 + $0x212] sm:$0xff] }
 0x112   :  { %v2091_v25 = vadd.f32 %v3130_v3, %v2020_v46  ;;  %v1566_v1 = vmul.f32 %v3063_v59, %v1497_v4  ;;  %v582_v6 = vmul.f32 %v3039_v58, %v1102_v26  ;;  %v1763_v12 = vmul.f32 %v3043_v52, %v1694_v2 }
 0x113   :  { %v1824_v60 = vadd.f32 %v1760_v61, %v1627_v14  ;;  %v1432_v19 = vadd.f32 %v1368_v62, %v1235_v9  ;;  %v1039_v23 = vadd.f32 %v975_v39, %v842_v8  ;;  %v1172_v20 = vmul.f32 %v3047_v0, %v1103_v44 }
 0x114   :  { %2155 = vst [vmem:[#allocation8 + $0xf0] sm:$0xff] %v2091_v25  ;;  %v1960_v15 = vmul.f32 %v3055_v11, %v3214_v17  ;;  %v646_v30 = vadd.f32 %v582_v6, %v385_v63  ;;  %v779_v18 = vmul.f32 %v3021_v24, %v1299_v34  ;;  %v1369_v43 = vmul.f32 %v3059_v33, %v1300_v31  ;;  %v1499_v34 = vld [vmem:[#allocation2 + $0x210] sm:$0xff] }
 0x115   :  { %v2021_v42 = vadd.f32 %v1957_v16, %v1824_v60  ;;  %v1630_v51 = vadd.f32 %v1566_v1, %v1432_v19  ;;  %v1236_v47 = vadd.f32 %v1172_v20, %v1039_v23  ;;  %v976_v36 = vmul.f32 %v3027_v37, %v1497_v4  ;;  %v1500_v1 = vld [vmem:[#allocation2 + $0x218] sm:$0xff] }
 0x116   :  { %v843_v7 = vadd.f32 %v779_v18, %v646_v30  ;;  %v386_v38 = vmul.f32 %v3035_v53, %v906_v5  ;;  %v583_v22 = vmul.f32 %v3039_v58, %v1103_v44  ;;  %v1567_v50 = vmul.f32 %v3063_v59, %v1498_v55  ;;  %v1696_v5 = vld [vmem:[#allocation2 + $0x211] sm:$0xff] }
 0x117   :  { %v2092_v21 = vadd.f32 %v3130_v3, %v2021_v42  ;;  %v1827_v48 = vadd.f32 %v1763_v12, %v1630_v51  ;;  %v1433_v26 = vadd.f32 %v1369_v43, %v1236_v47  ;;  %v1764_v13 = vmul.f32 %v3043_v52, %v1695_v29  ;;  %v1894_v42 = vld [vmem:[#allocation2 + $0x21a] sm:$0xff] }
 0x118   :  { %v1040_v54 = vadd.f32 %v976_v36, %v843_v7  ;;  %v1173_v32 = vmul.f32 %v3047_v0, %v1694_v2  ;;  %v647_v28 = vadd.f32 %v583_v22, %v386_v38  ;;  %v780_v45 = vmul.f32 %v3021_v24, %v1300_v31  ;;  %v1697_v31 = vld [vmem:[#allocation2 + $0x219] sm:$0xff]  ;;  %v1501_v7 = vld [vmem:[#allocation2 + $0x228] sm:$0xff] }
 0x119   :  { %2156 = vst [vmem:[#allocation8 + $0xf8] sm:$0xff] %v2092_v21  ;;  %v2024_v10 = vadd.f32 %v1960_v15, %v1827_v48  ;;  %v1631_v27 = vadd.f32 %v1567_v50, %v1433_v26  ;;  %v1961_v41 = vmul.f32 %v3055_v11, %v1892_v56  ;;  %v1370_v61 = vmul.f32 %v3059_v33, %v3214_v17  ;;  %v1698_v50 = vld [vmem:[#allocation2 + $0x229] sm:$0xff] }
 0x11a   :  { %v1237_v57 = vadd.f32 %v1173_v32, %v1040_v54  ;;  %v844_v49 = vadd.f32 %v780_v45, %v647_v28  ;;  %v977_v40 = vmul.f32 %v3027_v37, %v1498_v55  ;;  %v387_v46 = vmul.f32 %v3035_v53, %v1497_v4  ;;  %v1895_v54 = vld [vmem:[#allocation2 + $0x22a] sm:$0xff] }
 0x11b   :  { %v2095_v14 = vadd.f32 %v3130_v3, %v2024_v10  ;;  %v1828_v16 = vadd.f32 %v1764_v13, %v1631_v27  ;;  %v1568_v62 = vmul.f32 %v3063_v59, %v1499_v34  ;;  %v584_v44 = vmul.f32 %v3039_v58, %v1694_v2 }
 0x11c   :  { %v1434_v9 = vadd.f32 %v1370_v61, %v1237_v57  ;;  %v1765_v8 = vmul.f32 %v3043_v52, %v1696_v5  ;;  %v1041_v39 = vadd.f32 %v977_v40, %v844_v49  ;;  %v1174_v63 = vmul.f32 %v3047_v0, %v1695_v29 }
 0x11d   :  { %2159 = vst [vmem:[#allocation8 + $0x110] sm:$0xff] %v2095_v14  ;;  %v2025_v25 = vadd.f32 %v1961_v41, %v1828_v16  ;;  %v1962_v60 = vmul.f32 %v3055_v11, %v1893_v35  ;;  %v648_v4 = vadd.f32 %v584_v44, %v387_v46  ;;  %v781_v6 = vmul.f32 %v3021_v24, %v3214_v17  ;;  %v1502_v16 = vld [vmem:[#allocation2 + $0x230] sm:$0xff] }
 0x11e   :  { %v1632_v19 = vadd.f32 %v1568_v62, %v1434_v9  ;;  %v1238_v12 = vadd.f32 %v1174_v63, %v1041_v39  ;;  %v1371_v2 = vmul.f32 %v3059_v33, %v1892_v56  ;;  %v978_v23 = vmul.f32 %v3027_v37, %v1499_v34  ;;  %v1699_v62 = vld [vmem:[#allocation2 + $0x231] sm:$0xff] }
 0x11f   :  { %v2096_v20 = vadd.f32 %v3130_v3, %v2025_v25  ;;  %v845_v15 = vadd.f32 %v781_v6, %v648_v4  ;;  %v388_v30 = vmul.f32 %v3035_v53, %v1498_v55  ;;  %v585_v18 = vmul.f32 %v3039_v58, %v1695_v29  ;;  %v1896_v25 = vld [vmem:[#allocation2 + $0x232] sm:$0xff] }
 0x120   :  { %v1829_v51 = vadd.f32 %v1765_v8, %v1632_v19  ;;  %v1435_v47 = vadd.f32 %v1371_v2, %v1238_v12  ;;  %v1569_v43 = vmul.f32 %v3063_v59, %v1500_v1  ;;  %v1766_v17 = vmul.f32 %v3043_v52, %v1697_v31 }
 0x121   :  { %2160 = vst [vmem:[#allocation8 + $0x118] sm:$0xff] %v2096_v20  ;;  %v1042_v36 = vadd.f32 %v978_v23, %v845_v15  ;;  %v1175_v21 = vmul.f32 %v3047_v0, %v1696_v5  ;;  %v649_v38 = vadd.f32 %v585_v18, %v388_v30  ;;  %v782_v22 = vmul.f32 %v3021_v24, %v1892_v56  ;;  %v1503_v15 = vld [vmem:[#allocation2 + $0x240] sm:$0xff] }
 0x122   :  { %v2026_v48 = vadd.f32 %v1962_v60, %v1829_v51  ;;  %v1633_v26 = vadd.f32 %v1569_v43, %v1435_v47  ;;  %v1963_v55 = vmul.f32 %v3055_v11, %v1894_v42  ;;  %v1372_v29 = vmul.f32 %v3059_v33, %v1893_v35  ;;  %v1700_v43 = vld [vmem:[#allocation2 + $0x241] sm:$0xff] }
 0x123   :  { %v1239_v13 = vadd.f32 %v1175_v21, %v1042_v36  ;;  %v846_v32 = vadd.f32 %v782_v22, %v649_v38  ;;  %v979_v28 = vmul.f32 %v3027_v37, %v1500_v1  ;;  %v389_v45 = vmul.f32 %v3035_v53, %v1499_v34  ;;  %v1897_v36 = vld [vmem:[#allocation2 + $0x242] sm:$0xff] }
 0x124   :  { %v2097_v10 = vadd.f32 %v3130_v3, %v2026_v48  ;;  %v1830_v27 = vadd.f32 %v1766_v17, %v1633_v26  ;;  %v1570_v41 = vmul.f32 %v3063_v59, %v1501_v7  ;;  %v586_v56 = vmul.f32 %v3039_v58, %v1696_v5 }
 0x125   :  { %v1436_v61 = vadd.f32 %v1372_v29, %v1239_v13  ;;  %v1767_v57 = vmul.f32 %v3043_v52, %v1698_v50  ;;  %v1043_v49 = vadd.f32 %v979_v28, %v846_v32  ;;  %v1176_v40 = vmul.f32 %v3047_v0, %v1697_v31 }
 0x126   :  { %2161 = vst [vmem:[#allocation8 + $0x120] sm:$0xff] %v2097_v10  ;;  %v2027_v46 = vadd.f32 %v1963_v55, %v1830_v27  ;;  %v1964_v14 = vmul.f32 %v3055_v11, %v1895_v54  ;;  %v650_v34 = vadd.f32 %v586_v56, %v389_v45  ;;  %v783_v44 = vmul.f32 %v3021_v24, %v1893_v35  ;;  %v1504_v27 = vld [vmem:[#allocation2 + $0x248] sm:$0xff] }
 0x127   :  { %v1634_v9 = vadd.f32 %v1570_v41, %v1436_v61  ;;  %v1240_v8 = vadd.f32 %v1176_v40, %v1043_v49  ;;  %v1373_v39 = vmul.f32 %v3059_v33, %v1894_v42  ;;  %v980_v5 = vmul.f32 %v3027_v37, %v1501_v7  ;;  %v1701_v41 = vld [vmem:[#allocation2 + $0x249] sm:$0xff] }
 0x128   :  { %v2098_v63 = vadd.f32 %v3130_v3, %v2027_v46  ;;  %v847_v60 = vadd.f32 %v783_v44, %v650_v34  ;;  %v390_v4 = vmul.f32 %v3035_v53, %v1500_v1  ;;  %v587_v6 = vmul.f32 %v3039_v58, %v1697_v31  ;;  %v1898_v46 = vld [vmem:[#allocation2 + $0x24a] sm:$0xff] }
 0x129   :  { %v1831_v19 = vadd.f32 %v1767_v57, %v1634_v9  ;;  %v1437_v12 = vadd.f32 %v1373_v39, %v1240_v8  ;;  %v1571_v2 = vmul.f32 %v3063_v59, %v1502_v16  ;;  %v1768_v35 = vmul.f32 %v3043_v52, %v1699_v62 }
 0x12a   :  { %2162 = vst [vmem:[#allocation8 + $0x128] sm:$0xff] %v2098_v63  ;;  %v1044_v23 = vadd.f32 %v980_v5, %v847_v60  ;;  %v1177_v20 = vmul.f32 %v3047_v0, %v1698_v50  ;;  %v651_v30 = vadd.f32 %v587_v6, %v390_v4  ;;  %v784_v18 = vmul.f32 %v3021_v24, %v1894_v42  ;;  %v1505_v60 = vld [vmem:[#allocation2 + $0x258] sm:$0xff] }
 0x12b   :  { %v2028_v51 = vadd.f32 %v1964_v14, %v1831_v19  ;;  %v1635_v47 = vadd.f32 %v1571_v2, %v1437_v12  ;;  %v1965_v1 = vmul.f32 %v3055_v11, %v1896_v25  ;;  %v1374_v31 = vmul.f32 %v3059_v33, %v1895_v54  ;;  %v1702_v2 = vld [vmem:[#allocation2 + $0x259] sm:$0xff] }
 0x12c   :  { %v1241_v17 = vadd.f32 %v1177_v20, %v1044_v23  ;;  %v848_v21 = vadd.f32 %v784_v18, %v651_v30  ;;  %v981_v38 = vmul.f32 %v3027_v37, %v1502_v16  ;;  %v391_v22 = vmul.f32 %v3035_v53, %v1501_v7  ;;  %v1899_v23 = vld [vmem:[#allocation2 + $0x25a] sm:$0xff] }
 0x12d   :  { %v2099_v48 = vadd.f32 %v3130_v3, %v2028_v51  ;;  %v1832_v26 = vadd.f32 %v1768_v35, %v1635_v47  ;;  %v1572_v55 = vmul.f32 %v3063_v59, %v1503_v15  ;;  %v588_v42 = vmul.f32 %v3039_v58, %v1698_v50 }
 0x12e   :  { %v1438_v29 = vadd.f32 %v1374_v31, %v1241_v17  ;;  %v1769_v13 = vmul.f32 %v3043_v52, %v1700_v43  ;;  %v1045_v32 = vadd.f32 %v981_v38, %v848_v21  ;;  %v1178_v28 = vmul.f32 %v3047_v0, %v1699_v62 }
 0x12f   :  { %2163 = vst [vmem:[#allocation8 + $0x130] sm:$0xff] %v2099_v48  ;;  %v2029_v45 = vadd.f32 %v1965_v1, %v1832_v26  ;;  %v1966_v10 = vmul.f32 %v3055_v11, %v1897_v36  ;;  %v652_v7 = vadd.f32 %v588_v42, %v391_v22  ;;  %v785_v56 = vmul.f32 %v3021_v24, %v1895_v54  ;;  %v1506_v26 = vld [vmem:[#allocation2 + $0x260] sm:$0xff] }
 0x130   :  { %v1636_v61 = vadd.f32 %v1572_v55, %v1438_v29  ;;  %v1242_v57 = vadd.f32 %v1178_v28, %v1045_v32  ;;  %v1375_v49 = vmul.f32 %v3059_v33, %v1896_v25  ;;  %v982_v50 = vmul.f32 %v3027_v37, %v1503_v15  ;;  %v1703_v55 = vld [vmem:[#allocation2 + $0x261] sm:$0xff] }
 0x131   :  { %v2100_v40 = vadd.f32 %v3130_v3, %v2029_v45  ;;  %v849_v14 = vadd.f32 %v785_v56, %v652_v7  ;;  %v392_v34 = vmul.f32 %v3035_v53, %v1502_v16  ;;  %v589_v44 = vmul.f32 %v3039_v58, %v1699_v62  ;;  %v1900_v45 = vld [vmem:[#allocation2 + $0x262] sm:$0xff] }
 0x132   :  { %v1833_v9 = vadd.f32 %v1769_v13, %v1636_v61  ;;  %v1439_v8 = vadd.f32 %v1375_v49, %v1242_v57  ;;  %v1573_v39 = vmul.f32 %v3063_v59, %v1504_v27  ;;  %v1770_v54 = vmul.f32 %v3043_v52, %v1701_v41 }
 0x133   :  { %2164 = vst [vmem:[#allocation8 + $0x138] sm:$0xff] %v2100_v40  ;;  %v1046_v5 = vadd.f32 %v982_v50, %v849_v14  ;;  %v1179_v63 = vmul.f32 %v3047_v0, %v1700_v43  ;;  %v653_v4 = vadd.f32 %v589_v44, %v392_v34  ;;  %v786_v6 = vmul.f32 %v3021_v24, %v1896_v25  ;;  %v1507_v14 = vld [vmem:[#allocation2 + $0x270] sm:$0xff] }
 0x134   :  { %v2030_v19 = vadd.f32 %v1966_v10, %v1833_v9  ;;  %v1637_v12 = vadd.f32 %v1573_v39, %v1439_v8  ;;  %v1967_v16 = vmul.f32 %v3055_v11, %v1898_v46  ;;  %v1376_v62 = vmul.f32 %v3059_v33, %v1897_v36  ;;  %v1704_v39 = vld [vmem:[#allocation2 + $0x271] sm:$0xff] }
 0x135   :  { %v1243_v35 = vadd.f32 %v1179_v63, %v1046_v5  ;;  %v850_v20 = vadd.f32 %v786_v6, %v653_v4  ;;  %v983_v30 = vmul.f32 %v3027_v37, %v1504_v27  ;;  %v393_v18 = vmul.f32 %v3035_v53, %v1503_v15  ;;  %v3319_v5 = vld [vmem:[#allocation2 + $0x272] sm:$0xff] }
 0x136   :  { %v2101_v51 = vadd.f32 %v3130_v3, %v2030_v19  ;;  %v1834_v47 = vadd.f32 %v1770_v54, %v1637_v12  ;;  %v1574_v1 = vmul.f32 %v3063_v59, %v1505_v60  ;;  %v590_v25 = vmul.f32 %v3039_v58, %v1700_v43 }
 0x137   :  { %v1440_v31 = vadd.f32 %v1376_v62, %v1243_v35  ;;  %v1771_v17 = vmul.f32 %v3043_v52, %v1702_v2  ;;  %v1047_v21 = vadd.f32 %v983_v30, %v850_v20  ;;  %v1180_v38 = vmul.f32 %v3047_v0, %v1701_v41 }
 0x138   :  { %2165 = vst [vmem:[#allocation8 + $0x140] sm:$0xff] %v2101_v51  ;;  %v2031_v22 = vadd.f32 %v1967_v16, %v1834_v47  ;;  %v1968_v48 = vmul.f32 %v3055_v11, %v1899_v23  ;;  %v654_v15 = vadd.f32 %v590_v25, %v393_v18  ;;  %v787_v42 = vmul.f32 %v3021_v24, %v1897_v36  ;;  %v1508_v47 = vld [vmem:[#allocation2 + $0x278] sm:$0xff] }
 0x139   :  { %v1638_v29 = vadd.f32 %v1574_v1, %v1440_v31  ;;  %v1244_v13 = vadd.f32 %v1180_v38, %v1047_v21  ;;  %v1377_v32 = vmul.f32 %v3059_v33, %v1898_v46  ;;  %v984_v43 = vmul.f32 %v3027_v37, %v1505_v60 }
 0x13a   :  { %v2102_v28 = vadd.f32 %v3130_v3, %v2031_v22  ;;  %v851_v10 = vadd.f32 %v787_v42, %v654_v15  ;;  %v394_v7 = vmul.f32 %v3035_v53, %v1504_v27  ;;  %v591_v56 = vmul.f32 %v3039_v58, %v1701_v41  ;;  %v3334_v22 = vld [vmem:[#allocation2 + $0x27a] sm:$0xff] }
 0x13b   :  { %v1835_v61 = vadd.f32 %v1771_v17, %v1638_v29  ;;  %v1441_v57 = vadd.f32 %v1377_v32, %v1244_v13  ;;  %v1575_v49 = vmul.f32 %v3063_v59, %v1506_v26  ;;  %v1772_v36 = vmul.f32 %v3043_v52, %v1703_v55 }
 0x13c   :  { %2166 = vst [vmem:[#allocation8 + $0x148] sm:$0xff] %v2102_v28  ;;  %v1048_v50 = vadd.f32 %v984_v43, %v851_v10  ;;  %v1181_v40 = vmul.f32 %v3047_v0, %v1702_v2  ;;  %v655_v34 = vadd.f32 %v591_v56, %v394_v7  ;;  %v788_v44 = vmul.f32 %v3021_v24, %v1898_v46  ;;  %v3343_v10 = vld [vmem:[#allocation3 + $0x2] ss:$0 sm:$0xff] }
 0x13d   :  { %v2032_v9 = vadd.f32 %v1968_v48, %v1835_v61  ;;  %v1639_v8 = vadd.f32 %v1575_v49, %v1441_v57  ;;  %v1969_v27 = vmul.f32 %v3055_v11, %v1900_v45  ;;  %v1378_v41 = vmul.f32 %v3059_v33, %v1899_v23  ;;  %v3350_v61 = vld [vmem:[#allocation2 + $0x28a] sm:$0xff]  ;;  %v3352_v57 = vld [vmem:[#allocation3 + $0x3] ss:$0 sm:$0xff] }
 0x13e   :  { %v1245_v54 = vadd.f32 %v1181_v40, %v1048_v50  ;;  %v852_v63 = vadd.f32 %v788_v44, %v655_v34  ;;  %v985_v4 = vmul.f32 %v3027_v37, %v1506_v26  ;;  %v395_v6 = vmul.f32 %v3035_v53, %v1505_v60  ;;  %v1705_v60 = vld [vmem:[#allocation2 + $0x279] sm:$0xff] }
 0x13f   :  { %v2103_v19 = vadd.f32 %v3130_v3, %v2032_v9  ;;  %v1836_v12 = vadd.f32 %v1772_v36, %v1639_v8  ;;  %v1576_v46 = vmul.f32 %v3063_v59, %v1507_v14  ;;  %v592_v16 = vmul.f32 %v3039_v58, %v1702_v2  ;;  %v3355_v36 = vld [vmem:[#allocation3] ss:$0 sm:$0xff]  ;;  %v3364_v8 = vld [vmem:[#allocation3 + $0x7] ss:$0 sm:$0xff] }
 0x140   :  { %v1442_v62 = vadd.f32 %v1378_v41, %v1245_v54  ;;  %v1773_v35 = vmul.f32 %v3043_v52, %v1704_v39  ;;  %v1049_v20 = vadd.f32 %v985_v4, %v852_v63  ;;  %v1182_v30 = vmul.f32 %v3047_v0, %v1703_v55  ;;  %v3367_v54 = vld [vmem:[#allocation3 + $0x4] ss:$0 sm:$0xff] }
 0x141   :  { %2167 = vst [vmem:[#allocation8 + $0x150] sm:$0xff] %v2103_v19  ;;  %v2033_v18 = vadd.f32 %v1969_v27, %v1836_v12  ;;  %v1970_v51 = vmul.f32 %v3055_v11, %v3319_v5  ;;  %v656_v1 = vadd.f32 %v592_v16, %v395_v6  ;;  %v789_v25 = vmul.f32 %v3021_v24, %v1899_v23  ;;  %v1707_v6 = vld [vmem:[#allocation2 + $0x291] sm:$0xff]  ;;  %v3374_v16 = vld [vmem:[#allocation3 + $0x5] ss:$0 sm:$0xff] }
 0x142   :  { %v1640_v31 = vadd.f32 %v1576_v46, %v1442_v62  ;;  %v1246_v17 = vadd.f32 %v1182_v30, %v1049_v20  ;;  %v1379_v2 = vmul.f32 %v3059_v33, %v1900_v45  ;;  %v986_v21 = vmul.f32 %v3027_v37, %v1507_v14  ;;  %v3341_v37 = vld [vmem:[#allocation2 + $0x288] sm:$0xff]  ;;  %v1904_v30 = vld [vmem:[#allocation2 + $0x292] sm:$0xff] }
 0x143   :  { %v2104_v38 = vadd.f32 %v3130_v3, %v2033_v18  ;;  %v853_v48 = vadd.f32 %v789_v25, %v656_v1  ;;  %v396_v15 = vmul.f32 %v3035_v53, %v1506_v26  ;;  %v593_v42 = vmul.f32 %v3039_v58, %v1703_v55  ;;  %v3383_v25 = vld [vmem:[#allocation3 + $0x6] ss:$0 sm:$0xff] }
 0x144   :  { %v1837_v29 = vadd.f32 %v1773_v35, %v1640_v31  ;;  %v1443_v13 = vadd.f32 %v1379_v2, %v1246_v17  ;;  %v1577_v32 = vmul.f32 %v3063_v59, %v1508_v47  ;;  %v1774_v24 = vmul.f32 %v3043_v52, %v1705_v60  ;;  %v1706_v52 = vld [vmem:[#allocation2 + $0x289] sm:$0xff] }
 0x145   :  { %2168 = vst [vmem:[#allocation8 + $0x158] sm:$0xff] %v2104_v38  ;;  %v1050_v23 = vadd.f32 %v986_v21, %v853_v48  ;;  %v1183_v43 = vmul.f32 %v3047_v0, %v1704_v39  ;;  %v657_v28 = vadd.f32 %v593_v42, %v396_v15  ;;  %v790_v7 = vmul.f32 %v3343_v10, %v1900_v45  ;;  %v1511_v38 = vld [vmem:[#allocation2 + $0x2a0] sm:$0xff] }
 0x146   :  { %v2034_v53 = vadd.f32 %v1970_v51, %v1837_v29  ;;  %v1641_v26 = vadd.f32 %v1577_v32, %v1443_v13  ;;  %v1971_v58 = vmul.f32 %v3055_v11, %v3334_v22  ;;  %v1380_v55 = vmul.f32 %v3059_v33, %v3319_v5  ;;  %v3361_v33 = vld [vmem:[#allocation3 + $0x1] ss:$0 sm:$0xff] }
 0x147   :  { %v1247_v56 = vadd.f32 %v1183_v43, %v1050_v23  ;;  %v854_v0 = vadd.f32 %v790_v7, %v657_v28  ;;  %v987_v49 = vmul.f32 %v3352_v57, %v1508_v47  ;;  %v397_v45 = vmul.f32 %v3355_v36, %v1507_v14  ;;  %v1708_v32 = vld [vmem:[#allocation2 + $0x2a1] sm:$0xff] }
 0x148   :  { %v2105_v50 = vadd.f32 %v3130_v3, %v2034_v53  ;;  %v1838_v40 = vadd.f32 %v1774_v24, %v1641_v26  ;;  %v1578_v34 = vmul.f32 %v3063_v59, %v3341_v37  ;;  %v594_v44 = vmul.f32 %v3361_v33, %v1704_v39  ;;  %v1510_v59 = vld [vmem:[#allocation2 + $0x290] sm:$0xff]  ;;  %v3395_v23 = vld [vmem:[#allocation2 + $0x2a2] sm:$0xff] }
 0x149   :  { %v1444_v9 = vadd.f32 %v1380_v55, %v1247_v56  ;;  %v1775_v27 = vmul.f32 %v3364_v8, %v1706_v52  ;;  %v1051_v41 = vadd.f32 %v987_v49, %v854_v0  ;;  %v1184_v14 = vmul.f32 %v3367_v54, %v1705_v60 }
 0x14a   :  { %2169 = vst [vmem:[#allocation8 + $0x160] sm:$0xff] %v2105_v50  ;;  %v2035_v63 = vadd.f32 %v1971_v58, %v1838_v40  ;;  %v1972_v4 = vmul.f32 %v3055_v11, %v3350_v61  ;;  %v658_v19 = vadd.f32 %v594_v44, %v397_v45  ;;  %v791_v39 = vmul.f32 %v3343_v10, %v3319_v5  ;;  %v1512_v40 = vld [vmem:[#allocation2 + $0x2a8] sm:$0xff] }
 0x14b   :  { %v1642_v12 = vadd.f32 %v1578_v34, %v1444_v9  ;;  %v1248_v46 = vadd.f32 %v1184_v14, %v1051_v41  ;;  %v1381_v62 = vmul.f32 %v3374_v16, %v3334_v22  ;;  %v988_v35 = vmul.f32 %v3352_v57, %v3341_v37 }
 0x14c   :  { %v2106_v20 = vadd.f32 %v3130_v3, %v2035_v63  ;;  %v855_v11 = vadd.f32 %v791_v39, %v658_v19  ;;  %v398_v18 = vmul.f32 %v3355_v36, %v1508_v47  ;;  %v595_v51 = vmul.f32 %v3361_v33, %v1705_v60  ;;  %v3390_v60 = vld [vmem:[#allocation3 + $0x8] ss:$0 sm:$0xff]  ;;  %v1906_v63 = vld [vmem:[#allocation2 + $0x2aa] sm:$0xff] }
 0x14d   :  { %v1839_v1 = vadd.f32 %v1775_v27, %v1642_v12  ;;  %v1445_v5 = vadd.f32 %v1381_v62, %v1248_v46  ;;  %v1579_v31 = vmul.f32 %v3383_v25, %v1510_v59  ;;  %v1776_v17 = vmul.f32 %v3364_v8, %v1707_v6 }
 0x14e   :  { %2170 = vst [vmem:[#allocation8 + $0x168] sm:$0xff] %v2106_v20  ;;  %v1052_v2 = vadd.f32 %v988_v35, %v855_v11  ;;  %v1185_v21 = vmul.f32 %v3367_v54, %v1706_v52  ;;  %v659_v48 = vadd.f32 %v595_v51, %v398_v18  ;;  %v792_v15 = vmul.f32 %v3343_v10, %v3334_v22  ;;  %v1513_v11 = vld [vmem:[#allocation2 + $0x2b8] sm:$0xff] }
 0x14f   :  { %v2036_v47 = vadd.f32 %v1972_v4, %v1839_v1  ;;  %v1643_v42 = vadd.f32 %v1579_v31, %v1445_v5  ;;  %v1973_v29 = vmul.f32 %v3390_v60, %v1904_v30  ;;  %v1382_v13 = vmul.f32 %v3374_v16, %v3350_v61  ;;  %v1710_v5 = vld [vmem:[#allocation2 + $0x2b9] sm:$0xff] }
 0x150   :  { %v1249_v24 = vadd.f32 %v1185_v21, %v1052_v2  ;;  %v856_v43 = vadd.f32 %v792_v15, %v659_v48  ;;  %v989_v28 = vmul.f32 %v3352_v57, %v1510_v59  ;;  %v399_v7 = vmul.f32 %v3355_v36, %v3341_v37  ;;  %v1709_v37 = vld [vmem:[#allocation2 + $0x2a9] sm:$0xff] }
 0x151   :  { %v2107_v22 = vadd.f32 %v3130_v3, %v2036_v47  ;;  %v1840_v53 = vadd.f32 %v1776_v17, %v1643_v42  ;;  %v1580_v26 = vmul.f32 %v3383_v25, %v1511_v38  ;;  %v596_v58 = vmul.f32 %v3361_v33, %v1706_v52  ;;  %v3421_v17 = vld [vmem:[#allocation2 + $0x2ba] sm:$0xff] }
 0x152   :  { %v1446_v55 = vadd.f32 %v1382_v13, %v1249_v24  ;;  %v1777_v56 = vmul.f32 %v3364_v8, %v1708_v32  ;;  %v1053_v0 = vadd.f32 %v989_v28, %v856_v43  ;;  %v1186_v49 = vmul.f32 %v3367_v54, %v1707_v6 }
 0x153   :  { %2171 = vst [vmem:[#allocation8 + $0x170] sm:$0xff] %v2107_v22  ;;  %v2037_v45 = vadd.f32 %v1973_v29, %v1840_v53  ;;  %v1974_v50 = vmul.f32 %v3390_v60, %v3395_v23  ;;  %v660_v34 = vadd.f32 %v596_v58, %v399_v7  ;;  %v793_v44 = vmul.f32 %v3343_v10, %v3350_v61  ;;  %v1514_v22 = vld [vmem:[#allocation2 + $0x2c0] sm:$0xff] }
 0x154   :  { %v1644_v9 = vadd.f32 %v1580_v26, %v1446_v55  ;;  %v1250_v27 = vadd.f32 %v1186_v49, %v1053_v0  ;;  %v1383_v52 = vmul.f32 %v3374_v16, %v1904_v30  ;;  %v990_v41 = vmul.f32 %v3352_v57, %v1511_v38  ;;  %v1711_v53 = vld [vmem:[#allocation2 + $0x2c1] sm:$0xff] }
 0x155   :  { %v2108_v14 = vadd.f32 %v3130_v3, %v2037_v45  ;;  %v857_v4 = vadd.f32 %v793_v44, %v660_v34  ;;  %v400_v19 = vmul.f32 %v3355_v36, %v1510_v59  ;;  %v597_v39 = vmul.f32 %v3361_v33, %v1707_v6  ;;  %v1908_v45 = vld [vmem:[#allocation2 + $0x2c2] sm:$0xff] }
 0x156   :  { %v1841_v12 = vadd.f32 %v1777_v56, %v1644_v9  ;;  %v1447_v46 = vadd.f32 %v1383_v52, %v1250_v27  ;;  %v1581_v62 = vmul.f32 %v3383_v25, %v1512_v40  ;;  %v1778_v61 = vmul.f32 %v3364_v8, %v1709_v37 }
 0x157   :  { %2172 = vst [vmem:[#allocation8 + $0x178] sm:$0xff] %v2108_v14  ;;  %v1054_v35 = vadd.f32 %v990_v41, %v857_v4  ;;  %v1187_v20 = vmul.f32 %v3367_v54, %v1708_v32  ;;  %v661_v18 = vadd.f32 %v597_v39, %v400_v19  ;;  %v794_v3 = vmul.f32 %v3343_v10, %v1904_v30  ;;  %v3428_v30 = vld [vmem:[%s3580_s1] ss:$0 sm:$0xff]  ;;  %v1515_v4 = vld [vmem:[#allocation2 + $0x2d0] sm:$0xff]  ;;  %s2322_s1 = smov [#allocation8]  }
 0x158   :  { %v2038_v51 = vadd.f32 %v1974_v50, %v1841_v12  ;;  %v1645_v1 = vadd.f32 %v1581_v62, %v1447_v46  ;;  %v1975_v59 = vmul.f32 %v3390_v60, %v1906_v63  ;;  %v1384_v6 = vmul.f32 %v3374_v16, %v3395_v23  ;;  %v1712_v62 = vld [vmem:[#allocation2 + $0x2d1] sm:$0xff]  ;;  %s2194_s15 = sshll.u32 %s2322_s1, 4  ;;  %s2195_s15 = int_to_ptr.vmem [resolvable:$true] %s2194_s15 }
 0x159   :  { %v1251_v31 = vadd.f32 %v1187_v20, %v1054_v35  ;;  %v858_v2 = vadd.f32 %v794_v3, %v661_v18  ;;  %v991_v21 = vmul.f32 %v3352_v57, %v1512_v40  ;;  %v401_v48 = vmul.f32 %v3355_v36, %v1511_v38  ;;  %v1909_v35 = vld [vmem:[#allocation2 + $0x2d2] sm:$0xff]  ;;  %s2289_s16 = scalar_lea.vmem %s2195_s15, 8192  ;;  %p2294_p3 = scmp.lt.s32.totalorder %s2195_s15, %s2195_s15 }
 0x15a   :  { %v2109_v15 = vadd.f32 %v3428_v30, %v2038_v51  ;;  %v1842_v47 = vadd.f32 %v1778_v61, %v1645_v1  ;;  %v1582_v42 = vmul.f32 %v3383_v25, %v1513_v11  ;;  %v598_v29 = vmul.f32 %v3361_v33, %v1708_v32  ;;  %p2290_p2 = scmp.ne.s32.totalorder %s2195_s15, %s2289_s16  ;;  %p2295_p4 = scmp.lt.s32.totalorder %s2289_s16, %s2289_s16 }
 0x15b   :  { %v1448_v13 = vadd.f32 %v1384_v6, %v1251_v31  ;;  %v1779_v24 = vmul.f32 %v3364_v8, %v1710_v5  ;;  %v1055_v43 = vadd.f32 %v991_v21, %v858_v2  ;;  %v1188_v28 = vmul.f32 %v3367_v54, %v1709_v37 }
 0x15c   :  { %2173 = vst [vmem:[#allocation8 + $0x180] sm:$0xff] %v2109_v15  ;;  %v2039_v38 = vadd.f32 %v1975_v59, %v1842_v47  ;;  %v1976_v7 = vmul.f32 %v3390_v60, %v3421_v17  ;;  %v662_v26 = vadd.f32 %v598_v29, %v401_v48  ;;  %v795_v58 = vmul.f32 %v3343_v10, %v3395_v23  ;;  %v1516_v47 = vld [vmem:[#allocation2 + $0x2d8] sm:$0xff]  ;;  %p2296_p5 = por %p2295_p4, %p2294_p3 }
 0x15d   :  { %v1646_v55 = vadd.f32 %v1582_v42, %v1448_v13  ;;  %v1252_v56 = vadd.f32 %v1188_v28, %v1055_v43  ;;  %v1385_v32 = vmul.f32 %v3374_v16, %v1906_v63  ;;  %v992_v0 = vmul.f32 %v3352_v57, %v1513_v11  ;;  %v1713_v42 = vld [vmem:[#allocation2 + $0x2d9] sm:$0xff] }
 0x15e   :  { %v2110_v49 = vadd.f32 %v3428_v30, %v2039_v38  ;;  %v859_v50 = vadd.f32 %v795_v58, %v662_v26  ;;  %v402_v34 = vmul.f32 %v3355_v36, %v1512_v40  ;;  %v599_v44 = vmul.f32 %v3361_v33, %v1709_v37  ;;  %v1910_v38 = vld [vmem:[#allocation2 + $0x2da] sm:$0xff]  ;;  %p2297_p6 = pnand %p2296_p5, %p2290_p2 }
 0x15f   :  { %v1843_v9 = vadd.f32 %v1779_v24, %v1646_v55  ;;  %v1449_v27 = vadd.f32 %v1385_v32, %v1252_v56  ;;  %v1583_v52 = vmul.f32 %v3383_v25, %v1514_v22  ;;  %v1780_v23 = vmul.f32 %v3364_v8, %v1711_v53 }
 0x160   :  { %2174 = vst [vmem:[#allocation8 + $0x188] sm:$0xff] %v2110_v49  ;;  %v1056_v41 = vadd.f32 %v992_v0, %v859_v50  ;;  %v1189_v14 = vmul.f32 %v3367_v54, %v1710_v5  ;;  %v663_v19 = vadd.f32 %v599_v44, %v402_v34  ;;  %v796_v39 = vmul.f32 %v3343_v10, %v1906_v63  ;;  %v1517_v50 = vld [vmem:[#allocation2 + $0x2e8] sm:$0xff] }
 0x161   :  { %v2040_v12 = vadd.f32 %v1976_v7, %v1843_v9  ;;  %v1647_v46 = vadd.f32 %v1583_v52, %v1449_v27  ;;  %v1977_v40 = vmul.f32 %v3390_v60, %v1908_v45  ;;  %v1386_v37 = vmul.f32 %v3374_v16, %v3421_v17  ;;  %v1714_v52 = vld [vmem:[#allocation2 + $0x2e9] sm:$0xff] }
 0x162   :  { %v1253_v61 = vadd.f32 %v1189_v14, %v1056_v41  ;;  %v860_v20 = vadd.f32 %v796_v39, %v663_v19  ;;  %v993_v18 = vmul.f32 %v3352_v57, %v1514_v22  ;;  %v403_v3 = vmul.f32 %v3355_v36, %v1513_v11  ;;  %v1911_v41 = vld [vmem:[#allocation2 + $0x2ea] sm:$0xff] }
 0x163   :  { %v2111_v51 = vadd.f32 %v3428_v30, %v2040_v12  ;;  %v1844_v1 = vadd.f32 %v1780_v23, %v1647_v46  ;;  %v1584_v63 = vmul.f32 %v3383_v25, %v1515_v4  ;;  %v600_v59 = vmul.f32 %v3361_v33, %v1710_v5 }
 0x164   :  { %v1450_v6 = vadd.f32 %v1386_v37, %v1253_v61  ;;  %v1781_v31 = vmul.f32 %v3364_v8, %v1712_v62  ;;  %v1057_v2 = vadd.f32 %v993_v18, %v860_v20  ;;  %v1190_v21 = vmul.f32 %v3367_v54, %v1711_v53 }
 0x165   :  { %2175 = vst [vmem:[#allocation8 + $0x190] sm:$0xff] %v2111_v51  ;;  %v2041_v48 = vadd.f32 %v1977_v40, %v1844_v1  ;;  %v1978_v15 = vmul.f32 %v3390_v60, %v1909_v35  ;;  %v664_v11 = vadd.f32 %v600_v59, %v403_v3  ;;  %v797_v29 = vmul.f32 %v3343_v10, %v3421_v17  ;;  %v1518_v1 = vld [vmem:[#allocation2 + $0x2f0] sm:$0xff] }
 0x166   :  { %v1648_v13 = vadd.f32 %v1584_v63, %v1450_v6  ;;  %v1254_v24 = vadd.f32 %v1190_v21, %v1057_v2  ;;  %v1387_v5 = vmul.f32 %v3374_v16, %v1908_v45  ;;  %v994_v43 = vmul.f32 %v3352_v57, %v1515_v4  ;;  %v1715_v63 = vld [vmem:[#allocation2 + $0x2f1] sm:$0xff] }
 0x167   :  { %v2112_v28 = vadd.f32 %v3428_v30, %v2041_v48  ;;  %v861_v7 = vadd.f32 %v797_v29, %v664_v11  ;;  %v404_v26 = vmul.f32 %v3355_v36, %v1514_v22  ;;  %v601_v58 = vmul.f32 %v3361_v33, %v1711_v53  ;;  %v1912_v48 = vld [vmem:[#allocation2 + $0x2f2] sm:$0xff] }
 0x168   :  { %v1845_v55 = vadd.f32 %v1781_v31, %v1648_v13  ;;  %v1451_v56 = vadd.f32 %v1387_v5, %v1254_v24  ;;  %v1585_v32 = vmul.f32 %v3383_v25, %v1516_v47  ;;  %v1782_v17 = vmul.f32 %v3364_v8, %v1713_v42 }
 0x169   :  { %2176 = vst [vmem:[#allocation8 + $0x198] sm:$0xff] %v2112_v28  ;;  %v1058_v0 = vadd.f32 %v994_v43, %v861_v7  ;;  %v1191_v49 = vmul.f32 %v3367_v54, %v1712_v62  ;;  %v665_v34 = vadd.f32 %v601_v58, %v404_v26  ;;  %v798_v44 = vmul.f32 %v3343_v10, %v1908_v45  ;;  %v1519_v7 = vld [vmem:[#allocation2 + $0x300] sm:$0xff] }
 0x16a   :  { %v2042_v9 = vadd.f32 %v1978_v15, %v1845_v55  ;;  %v1649_v27 = vadd.f32 %v1585_v32, %v1451_v56  ;;  %v1979_v22 = vmul.f32 %v3390_v60, %v1910_v38  ;;  %v1388_v53 = vmul.f32 %v3374_v16, %v1909_v35  ;;  %v1716_v32 = vld [vmem:[#allocation2 + $0x301] sm:$0xff] }
 0x16b   :  { %v1255_v23 = vadd.f32 %v1191_v49, %v1058_v0  ;;  %v862_v14 = vadd.f32 %v798_v44, %v665_v34  ;;  %v995_v19 = vmul.f32 %v3352_v57, %v1516_v47  ;;  %v405_v39 = vmul.f32 %v3355_v36, %v1515_v4  ;;  %v1913_v0 = vld [vmem:[#allocation2 + $0x302] sm:$0xff] }
 0x16c   :  { %v2113_v12 = vadd.f32 %v3428_v30, %v2042_v9  ;;  %v1846_v46 = vadd.f32 %v1782_v17, %v1649_v27  ;;  %v1586_v40 = vmul.f32 %v3383_v25, %v1517_v50  ;;  %v602_v45 = vmul.f32 %v3361_v33, %v1712_v62 }
 0x16d   :  { %v1452_v37 = vadd.f32 %v1388_v53, %v1255_v23  ;;  %v1783_v61 = vmul.f32 %v3364_v8, %v1714_v52  ;;  %v1059_v20 = vadd.f32 %v995_v19, %v862_v14  ;;  %v1192_v18 = vmul.f32 %v3367_v54, %v1713_v42 }
 0x16e   :  { %2177 = vst [vmem:[#allocation8 + $0x1a0] sm:$0xff] %v2113_v12  ;;  %v2043_v3 = vadd.f32 %v1979_v22, %v1846_v46  ;;  %v1980_v51 = vmul.f32 %v3390_v60, %v1911_v41  ;;  %v666_v4 = vadd.f32 %v602_v45, %v405_v39  ;;  %v799_v59 = vmul.f32 %v3343_v10, %v1909_v35  ;;  %v1520_v46 = vld [vmem:[#allocation2 + $0x308] sm:$0xff] }
 0x16f   :  { %v1650_v6 = vadd.f32 %v1586_v40, %v1452_v37  ;;  %v1256_v31 = vadd.f32 %v1192_v18, %v1059_v20  ;;  %v1389_v2 = vmul.f32 %v3374_v16, %v1910_v38  ;;  %v996_v62 = vmul.f32 %v3352_v57, %v1517_v50  ;;  %v1717_v40 = vld [vmem:[#allocation2 + $0x309] sm:$0xff] }
 0x170   :  { %v2114_v21 = vadd.f32 %v3428_v30, %v2043_v3  ;;  %v863_v15 = vadd.f32 %v799_v59, %v666_v4  ;;  %v406_v11 = vmul.f32 %v3355_v36, %v1516_v47  ;;  %v603_v29 = vmul.f32 %v3361_v33, %v1713_v42  ;;  %v1914_v3 = vld [vmem:[#allocation2 + $0x30a] sm:$0xff] }
 0x171   :  { %v1847_v13 = vadd.f32 %v1783_v61, %v1650_v6  ;;  %v1453_v24 = vadd.f32 %v1389_v2, %v1256_v31  ;;  %v1587_v5 = vmul.f32 %v3383_v25, %v1518_v1  ;;  %v1784_v35 = vmul.f32 %v3364_v8, %v1715_v63 }
 0x172   :  { %2178 = vst [vmem:[#allocation8 + $0x1a8] sm:$0xff] %v2114_v21  ;;  %v1060_v43 = vadd.f32 %v996_v62, %v863_v15  ;;  %v1193_v28 = vmul.f32 %v3367_v54, %v1714_v52  ;;  %v667_v26 = vadd.f32 %v603_v29, %v406_v11  ;;  %v800_v58 = vmul.f32 %v3343_v10, %v1910_v38  ;;  %v1521_v15 = vld [vmem:[#allocation2 + $0x318] sm:$0xff] }
 0x173   :  { %v2044_v55 = vadd.f32 %v1980_v51, %v1847_v13  ;;  %v1651_v56 = vadd.f32 %v1587_v5, %v1453_v24  ;;  %v1981_v47 = vmul.f32 %v3390_v60, %v1912_v48  ;;  %v1390_v42 = vmul.f32 %v3374_v16, %v1911_v41  ;;  %v1718_v5 = vld [vmem:[#allocation2 + $0x319] sm:$0xff] }
 0x174   :  { %v1257_v17 = vadd.f32 %v1193_v28, %v1060_v43  ;;  %v864_v49 = vadd.f32 %v800_v58, %v667_v26  ;;  %v997_v34 = vmul.f32 %v3352_v57, %v1518_v1  ;;  %v407_v44 = vmul.f32 %v3355_v36, %v1517_v50  ;;  %v1915_v43 = vld [vmem:[#allocation2 + $0x31a] sm:$0xff] }
 0x175   :  { %v2115_v9 = vadd.f32 %v3428_v30, %v2044_v55  ;;  %v1848_v27 = vadd.f32 %v1784_v35, %v1651_v56  ;;  %v1588_v22 = vmul.f32 %v3383_v25, %v1519_v7  ;;  %v604_v38 = vmul.f32 %v3361_v33, %v1714_v52 }
 0x176   :  { %v1454_v53 = vadd.f32 %v1390_v42, %v1257_v17  ;;  %v1785_v23 = vmul.f32 %v3364_v8, %v1716_v32  ;;  %v1061_v14 = vadd.f32 %v997_v34, %v864_v49  ;;  %v1194_v19 = vmul.f32 %v3367_v54, %v1715_v63 }
 0x177   :  { %2179 = vst [vmem:[#allocation8 + $0x1b0] sm:$0xff] %v2115_v9  ;;  %v2045_v39 = vadd.f32 %v1981_v47, %v1848_v27  ;;  %v1982_v12 = vmul.f32 %v3390_v60, %v1913_v0  ;;  %v668_v50 = vadd.f32 %v604_v38, %v407_v44  ;;  %v801_v45 = vmul.f32 %v3343_v10, %v1911_v41  ;;  %v1522_v27 = vld [vmem:[#allocation2 + $0x320] sm:$0xff] }
 0x178   :  { %v1652_v37 = vadd.f32 %v1588_v22, %v1454_v53  ;;  %v1258_v61 = vadd.f32 %v1194_v19, %v1061_v14  ;;  %v1391_v20 = vmul.f32 %v3374_v16, %v1912_v48  ;;  %v998_v52 = vmul.f32 %v3352_v57, %v1519_v7  ;;  %v1719_v22 = vld [vmem:[#allocation2 + $0x321] sm:$0xff] }
 0x179   :  { %v2116_v18 = vadd.f32 %v3428_v30, %v2045_v39  ;;  %v865_v51 = vadd.f32 %v801_v45, %v668_v50  ;;  %v408_v4 = vmul.f32 %v3355_v36, %v1518_v1  ;;  %v605_v59 = vmul.f32 %v3361_v33, %v1715_v63  ;;  %v1916_v39 = vld [vmem:[#allocation2 + $0x322] sm:$0xff] }
 0x17a   :  { %v1849_v6 = vadd.f32 %v1785_v23, %v1652_v37  ;;  %v1455_v31 = vadd.f32 %v1391_v20, %v1258_v61  ;;  %v1589_v2 = vmul.f32 %v3383_v25, %v1520_v46  ;;  %v1786_v41 = vmul.f32 %v3364_v8, %v1717_v40 }
 0x17b   :  { %2180 = vst [vmem:[#allocation8 + $0x1b8] sm:$0xff] %v2116_v18  ;;  %v1062_v62 = vadd.f32 %v998_v52, %v865_v51  ;;  %v1195_v21 = vmul.f32 %v3367_v54, %v1716_v32  ;;  %v669_v11 = vadd.f32 %v605_v59, %v408_v4  ;;  %v802_v29 = vmul.f32 %v3343_v10, %v1912_v48  ;;  %v1523_v51 = vld [vmem:[#allocation2 + $0x330] sm:$0xff] }
 0x17c   :  { %v2046_v13 = vadd.f32 %v1982_v12, %v1849_v6  ;;  %v1653_v24 = vadd.f32 %v1589_v2, %v1455_v31  ;;  %v1983_v1 = vmul.f32 %v3390_v60, %v1914_v3  ;;  %v1392_v63 = vmul.f32 %v3374_v16, %v1913_v0  ;;  %v1720_v2 = vld [vmem:[#allocation2 + $0x331] sm:$0xff] }
 0x17d   :  { %v1259_v35 = vadd.f32 %v1195_v21, %v1062_v62  ;;  %v866_v28 = vadd.f32 %v802_v29, %v669_v11  ;;  %v999_v26 = vmul.f32 %v3352_v57, %v1520_v46  ;;  %v409_v58 = vmul.f32 %v3355_v36, %v1519_v7 }
 0x17e   :  { %v2117_v55 = vadd.f32 %v3428_v30, %v2046_v13  ;;  %v1850_v56 = vadd.f32 %v1786_v41, %v1653_v24  ;;  %v1590_v47 = vmul.f32 %v3383_v25, %v1521_v15  ;;  %v606_v48 = vmul.f32 %v3361_v33, %v1716_v32 }
 0x17f   :  { %v1456_v42 = vadd.f32 %v1392_v63, %v1259_v35  ;;  %v1787_v17 = vmul.f32 %v3364_v8, %v1718_v5  ;;  %v1063_v49 = vadd.f32 %v999_v26, %v866_v28  ;;  %v1196_v34 = vmul.f32 %v3367_v54, %v1717_v40 }
 0x180   :  { %2181 = vst [vmem:[#allocation8 + $0x1c0] sm:$0xff] %v2117_v55  ;;  %v2047_v44 = vadd.f32 %v1983_v1, %v1850_v56  ;;  %v1984_v9 = vmul.f32 %v3390_v60, %v1915_v43  ;;  %v670_v7 = vadd.f32 %v606_v48, %v409_v58  ;;  %v803_v38 = vmul.f32 %v3343_v10, %v1913_v0  ;;  %v1917_v1 = vld [vmem:[#allocation2 + $0x332] sm:$0xff] }
 0x181   :  { %v1654_v53 = vadd.f32 %v1590_v47, %v1456_v42  ;;  %v1260_v23 = vadd.f32 %v1196_v34, %v1063_v49  ;;  %v1393_v14 = vmul.f32 %v3374_v16, %v1914_v3  ;;  %v1000_v32 = vmul.f32 %v3352_v57, %v1521_v15  ;;  %v1524_v55 = vld [vmem:[#allocation2 + $0x338] sm:$0xff] }
 0x182   :  { %v2118_v19 = vadd.f32 %v3428_v30, %v2047_v44  ;;  %v867_v12 = vadd.f32 %v803_v38, %v670_v7  ;;  %v410_v50 = vmul.f32 %v3355_v36, %v1520_v46  ;;  %v607_v45 = vmul.f32 %v3361_v33, %v1717_v40  ;;  %v1721_v34 = vld [vmem:[#allocation2 + $0x339] sm:$0xff] }
 0x183   :  { %v1851_v37 = vadd.f32 %v1787_v17, %v1654_v53  ;;  %v1457_v61 = vadd.f32 %v1393_v14, %v1260_v23  ;;  %v1591_v20 = vmul.f32 %v3383_v25, %v1522_v27  ;;  %v1788_v0 = vmul.f32 %v3364_v8, %v1719_v22  ;;  %v1918_v14 = vld [vmem:[#allocation2 + $0x33a] sm:$0xff] }
 0x184   :  { %2182 = vst [vmem:[#allocation8 + $0x1c8] sm:$0xff] %v2118_v19  ;;  %v1064_v52 = vadd.f32 %v1000_v32, %v867_v12  ;;  %v1197_v18 = vmul.f32 %v3367_v54, %v1718_v5  ;;  %v671_v4 = vadd.f32 %v607_v45, %v410_v50  ;;  %v804_v59 = vmul.f32 %v3343_v10, %v1914_v3 }
 0x185   :  { %v2048_v6 = vadd.f32 %v1984_v9, %v1851_v37  ;;  %v1655_v31 = vadd.f32 %v1591_v20, %v1457_v61  ;;  %v1985_v46 = vmul.f32 %v3390_v60, %v1916_v39  ;;  %v1394_v40 = vmul.f32 %v3374_v16, %v1915_v43  ;;  %v2244_v61 = vld [vmem:[#allocation2] sm:$0xff] }
 0x186   :  { %v1261_v41 = vadd.f32 %v1197_v18, %v1064_v52  ;;  %v868_v62 = vadd.f32 %v804_v59, %v671_v4  ;;  %v1001_v21 = vmul.f32 %v3352_v57, %v1522_v27  ;;  %v411_v11 = vmul.f32 %v3355_v36, %v1521_v15 }
 0x187   :  { %v2119_v29 = vadd.f32 %v3428_v30, %v2048_v6  ;;  %v1852_v13 = vadd.f32 %v1788_v0, %v1655_v31  ;;  %v1592_v24 = vmul.f32 %v3383_v25, %v1523_v51  ;;  %v608_v3 = vmul.f32 %v3361_v33, %v1718_v5  ;;  %v1919_v6 = vld [vmem:[#allocation2 + $0x34a] sm:$0xff] }
 0x188   :  { %v1458_v63 = vadd.f32 %v1394_v40, %v1261_v41  ;;  %v1789_v35 = vmul.f32 %v3364_v8, %v1720_v2  ;;  %v1065_v28 = vadd.f32 %v1001_v21, %v868_v62  ;;  %v1198_v26 = vmul.f32 %v3367_v54, %v1719_v22  ;;  %v1723_v31 = vld [vmem:[#allocation2 + $0x351] sm:$0xff] }
 0x189   :  { %2183 = vst [vmem:[#allocation8 + $0x1d0] sm:$0xff] %v2119_v29  ;;  %v2049_v58 = vadd.f32 %v1985_v46, %v1852_v13  ;;  %v672_v56 = vadd.f32 %v608_v3, %v411_v11  ;;  %v805_v15 = vmul.f32 %v3343_v10, %v1915_v43  ;;  %v1002_v47 = vmul.f32 %v3352_v57, %v1523_v51  ;;  %v1920_v29 = vld [vmem:[#allocation2 + $0x352] sm:$0xff] }
 0x18a   :  { %v1656_v48 = vadd.f32 %v1592_v24, %v1458_v63  ;;  %v1986_v42 = vmul.f32 %v3390_v60, %v1917_v1  ;;  %v1262_v17 = vadd.f32 %v1198_v26, %v1065_v28  ;;  %v1395_v5 = vmul.f32 %v3374_v16, %v1916_v39 }
 0x18b   :  { %v2120_v49 = vadd.f32 %v3428_v30, %v2049_v58  ;;  %v869_v44 = vadd.f32 %v805_v15, %v672_v56  ;;  %v412_v9 = vmul.f32 %v3355_v36, %v1522_v27  ;;  %v609_v7 = vmul.f32 %v3361_v33, %v1719_v22  ;;  %v1722_v27 = vld [vmem:[#allocation2 + $0x349] sm:$0xff] }
 0x18c   :  { %v1853_v38 = vadd.f32 %v1789_v35, %v1656_v48  ;;  %v1459_v53 = vadd.f32 %v1395_v5, %v1262_v17  ;;  %v1593_v43 = vmul.f32 %v3383_v25, %v1524_v55  ;;  %v1199_v23 = vmul.f32 %v3367_v54, %v1720_v2 }
 0x18d   :  { %2184 = vst [vmem:[#allocation8 + $0x1d8] sm:$0xff] %v2120_v49  ;;  %v1066_v32 = vadd.f32 %v1002_v47, %v869_v44  ;;  %v673_v19 = vadd.f32 %v609_v7, %v412_v9  ;;  %v806_v12 = vmul.f32 %v3343_v10, %v1916_v39  ;;  %v1003_v50 = vmul.f32 %v3352_v57, %v1524_v55 }
 0x18e   :  { %v2050_v45 = vadd.f32 %v1986_v42, %v1853_v38  ;;  %v1657_v37 = vadd.f32 %v1593_v43, %v1459_v53  ;;  %v1790_v36 = vmul.f32 %v3364_v8, %v1721_v34  ;;  %v1396_v22 = vmul.f32 %v3374_v16, %v1917_v1 }
 0x18f   :  { %v1263_v33 = vadd.f32 %v1199_v23, %v1066_v32  ;;  %v1594_v20 = vmul.f32 %v2244_v61, %v3383_v25  ;;  %v870_v0 = vadd.f32 %v806_v12, %v673_v19  ;;  %v1987_v51 = vmul.f32 %v3390_v60, %v1918_v14 }
 0x190   :  { %v2121_v52 = vadd.f32 %v3428_v30, %v2050_v45  ;;  %v1854_v18 = vadd.f32 %v1790_v36, %v1657_v37  ;;  %v1791_v57 = vmul.f32 %v3364_v8, %v1722_v27  ;;  %v1200_v4 = vmul.f32 %v3367_v54, %v1721_v34 }
 0x191   :  { %v1460_v10 = vadd.f32 %v1396_v22, %v1263_v33  ;;  %v1067_v39 = vadd.f32 %v1003_v50, %v870_v0  ;;  %v1397_v25 = vmul.f32 %v3374_v16, %v1918_v14  ;;  %v1988_v62 = vmul.f32 %v3390_v60, %v1919_v6 }
 0x192   :  { %2185 = vst [vmem:[#allocation8 + $0x1e0] sm:$0xff] %v2121_v52  ;;  %v2051_v59 = vadd.f32 %v1987_v51, %v1854_v18  ;;  %v1792_v11 = vmul.f32 %v3364_v8, %v1723_v31  ;;  %v1989_v3 = vmul.f32 %v3390_v60, %v1920_v29 }
 0x193   :  { %v1658_v46 = vadd.f32 %v1594_v20, %v1460_v10  ;;  %v1264_v40 = vadd.f32 %v1200_v4, %v1067_v39 }
 0x194   :  { %v2122_v2 = vadd.f32 %v3428_v30, %v2051_v59 }
 0x195   :  { %v1855_v41 = vadd.f32 %v1791_v57, %v1658_v46  ;;  %v1461_v21 = vadd.f32 %v1397_v25, %v1264_v40 }
 0x196   :  { %2186 = vst [vmem:[#allocation8 + $0x1e8] sm:$0xff] %v2122_v2 }
 0x197   :  { %v2052_v13 = vadd.f32 %v1988_v62, %v1855_v41  ;;  %v1659_v54 = vadd.f32 %v1594_v20, %v1461_v21 }
 0x199   :  { %v2123_v24 = vadd.f32 %v3428_v30, %v2052_v13  ;;  %v1856_v1 = vadd.f32 %v1792_v11, %v1659_v54 }
 0x19b   :  { %2187 = vst [vmem:[#allocation8 + $0x1f0] sm:$0xff] %v2123_v24  ;;  %v2053_v16 = vadd.f32 %v1989_v3, %v1856_v1 }
 0x19d   :  { %v2124_v63 = vadd.f32 %v3428_v30, %v2053_v16 }
 0x19f   :  { %2188 = vst [vmem:[#allocation8 + $0x1f8] sm:$0xff] %v2124_v63 }
 0x1a0   :  { %2300 = shalt.err (!%p2297_p6)
}
 0x1a1   :  { %s2301_s19 = scalar_lea.hbm %s3582_s3, 8192 }
 0x1a2   :  { %p2302_p7 = scmp.ne.s32.totalorder %s3582_s3, %s2301_s19  ;;  %p2305_p8 = scmp.lt.u32.totalorder %s2301_s19, %s3582_s3 }
 0x1a4   :  { %p2307_p9 = pnand %p2305_p8, %p2302_p7 }
 0x1a6   :  { %2310 = shalt.err (!%p2307_p9)
}
 0x1a7   :  { %2200 = dma.vmem_to_hbm [thread:$0]  %s2195_s15, 8192, %s3582_s3, [#allocation5], %s2318_s22, %s2318_s22, %s2319_s23  }
 0x1a8   :  { %2315 = dma.done.wait [#allocation5], 8192  }
 0x1a9   :  { %2316 = vsyncadd [#allocation5], 4294959104 }
 0x1aa   :  { %2204 = vsyncpa [#allocation4], 1 }
 0x1ab   :  { %2205 = vsyncpa [#allocation7], 1 }
 0x1ac   :  { %2206 = vsyncpa [#allocation5], 1 }

</bundles_post_ra>
